<compile_context>
chip_gen: v5e
topology: v5e:2x2
jax: 0.10.0
libtpu: 0.0.40
codegen_flags: <defaults>
</compile_context>

<pallas_src>
import jax
import jax.numpy as jnp
from jax.experimental import pallas as pl
from jax.experimental.pallas import tpu as pltpu

# ---- static layout of the packed (1, VEC_PAD) f32 vector slab --------------
# All offsets are multiples of 128 (lane-aligned).
OFF_B1, OFF_G1, OFF_BE1 = 0, 512, 1024          # layer 1: bias, gamma, beta
OFF_B2, OFF_G2, OFF_BE2 = 1536, 1792, 2048      # layer 2
OFF_B3, OFF_G3, OFF_BE3 = 2304, 2432, 2560      # layer 3
OFF_HB = 2688                                   # fused head bias (8 lanes)
VEC_RAW = 2696
VEC_PAD = 2816                                  # padded to multiple of 128

F_IN = 60
F_PAD = 64                                      # padded K for the first matmul


def dueling_dqn_kernel(x_ref, w1_ref, w2_hbm, w3_hbm, wh_ref, vec_ref, out_ref,
                       w2_buf, w3_buf, sem):
    eps = 1e-5

    # Kick off the layer-2 / layer-3 weight DMAs immediately so they overlap
    # with layer-1 (and layer-2) compute instead of sitting on the critical
    # path.  (In a gridless pallas_call, auto-DMA'd inputs all land before
    # the body runs; these two are manual so they can be hidden.)
    cp2 = pltpu.make_async_copy(w2_hbm, w2_buf, sem.at[0])
    cp3 = pltpu.make_async_copy(w3_hbm, w3_buf, sem.at[1])
    cp2.start()
    cp3.start()

    def vec(off, n):
        return vec_ref[:, off:off + n]          # static lane slice -> (1, n) f32

    def elu(h):
        # F.elu, alpha=1.  exp(h)'s positive branch is discarded by the
        # select and cannot produce NaN, so no clamp is needed.  f32 on VPU/EUP.
        return jnp.where(h > 0, h, jnp.exp(h) - 1.0)

    def batch_norm(h, gamma, beta):
        # Training-mode BatchNorm1d: batch mean, biased batch variance.
        # Two-pass variance (E[(h-mean)^2]) for numerical robustness.
        mean = jnp.mean(h, axis=0, keepdims=True)
        centered = h - mean
        var = jnp.mean(centered * centered, axis=0, keepdims=True)
        scale = gamma * jax.lax.rsqrt(var + eps)
        return centered * scale + beta

    x = x_ref[...]                                                      # (B, 64) f32

    # Layer 1: bf16 x bf16 matmul, f32 accumulate; activation math in f32.
    h = jnp.dot(x.astype(jnp.bfloat16), w1_ref[...],
                preferred_element_type=jnp.float32) + vec(OFF_B1, 512)
    h = batch_norm(elu(h), vec(OFF_G1, 512), vec(OFF_BE1, 512))         # (B, 512)

    # Layer 2: wait for the prefetched w2 just before it is needed.
    cp2.wait()
    h = jnp.dot(h.astype(jnp.bfloat16), w2_buf[...],
                preferred_element_type=jnp.float32) + vec(OFF_B2, 256)
    h = batch_norm(elu(h), vec(OFF_G2, 256), vec(OFF_BE2, 256))         # (B, 256)

    # Layer 3.
    cp3.wait()
    h = jnp.dot(h.astype(jnp.bfloat16), w3_buf[...],
                preferred_element_type=jnp.float32) + vec(OFF_B3, 128)
    h = batch_norm(elu(h), vec(OFF_G3, 128), vec(OFF_BE3, 128))         # (B, 128)

    # Fused dueling head: col 0 = state value, cols 1..6 = raw advantages,
    # col 7 = zero padding.
    head = jnp.dot(h.astype(jnp.bfloat16), wh_ref[...],
                   preferred_element_type=jnp.float32) + vec(OFF_HB, 8)
    state_values = head[:, 0:1]                                         # (B, 1)
    raw_adv = head[:, 1:7]                                              # (B, 6)
    advantages = raw_adv - jnp.max(raw_adv, axis=1, keepdims=True)
    out_ref[...] = state_values + advantages                            # (B, 6)


def init_params(key):
    """Deterministic init matching PyTorch shapes.

    Linear: W ~ U(-k, k), b ~ U(-k, k), k = 1/sqrt(fan_in) (PyTorch default).
    Weights are stored transposed as (in, out).  BatchNorm: gamma=1, beta=0.
    """
    sizes = [(60, 512), (512, 256), (256, 128), (128, 1), (128, 6)]
    keys = jax.random.split(key, 2 * len(sizes))
    lin = []
    for i, (fan_in, fan_out) in enumerate(sizes):
        k = 1.0 / jnp.sqrt(jnp.float32(fan_in))
        w = jax.random.uniform(keys[2 * i], (fan_in, fan_out), jnp.float32, -k, k)
        b = jax.random.uniform(keys[2 * i + 1], (1, fan_out), jnp.float32, -k, k)
        lin.append((w, b))

    def bn(n):
        return jnp.ones((1, n), jnp.float32), jnp.zeros((1, n), jnp.float32)

    (w1, b1), (w2, b2), (w3, b3), (wv, bv), (wa, ba) = lin
    g1, be1 = bn(512)
    g2, be2 = bn(256)
    g3, be3 = bn(128)
    return (w1, b1, g1, be1,
            w2, b2, g2, be2,
            w3, b3, g3, be3,
            wv, bv, wa, ba)


def pack_params(params):
    """One-time packing into 5 lane-dense slabs (done outside the hot path).

    Weight matrices are stored in bfloat16 (halves weight DMA bytes); the
    per-feature vector slab (biases / BN gammas / betas / head bias) stays f32.
    """
    (w1, b1, g1, be1,
     w2, b2, g2, be2,
     w3, b3, g3, be3,
     wv, bv, wa, ba) = params

    # K-padded first-layer weight: rows 60..63 are zero (matches zero-padded x).
    w1p = jnp.zeros((F_PAD, 512), jnp.float32).at[:F_IN].set(w1)

    # Fused head weight / bias, padded to 8 output lanes.
    wh = (jnp.zeros((128, 8), jnp.float32)
          .at[:, 0:1].set(wv)
          .at[:, 1:7].set(wa))
    hb = (jnp.zeros((1, 8), jnp.float32)
          .at[:, 0:1].set(bv)
          .at[:, 1:7].set(ba))

    # Single f32 vector slab holding all biases / gammas / betas.
    flat = jnp.concatenate([b1, g1, be1, b2, g2, be2, b3, g3, be3, hb], axis=1)
    assert flat.shape == (1, VEC_RAW)
    vec = jnp.pad(flat, ((0, 0), (0, VEC_PAD - VEC_RAW)))

    return (w1p.astype(jnp.bfloat16),
            w2.astype(jnp.bfloat16),
            w3.astype(jnp.bfloat16),
            wh.astype(jnp.bfloat16),
            vec)


@jax.jit
def dueling_dqn_forward(x, packed):
    w1p, w2, w3, wh, vec = packed
    B = x.shape[0]
    x2 = x.reshape(B, -1).astype(jnp.float32)        # torch.flatten(x, start_dim=1)
    x2 = jnp.pad(x2, ((0, 0), (0, F_PAD - x2.shape[1])))   # 60 -> 64 features
    return pl.pallas_call(
        dueling_dqn_kernel,
        out_shape=jax.ShapeDtypeStruct((B, 6), jnp.float32),
        in_specs=[
            pl.BlockSpec(memory_space=pltpu.MemorySpace.VMEM),   # x
            pl.BlockSpec(memory_space=pltpu.MemorySpace.VMEM),   # w1p
            pl.BlockSpec(memory_space=pl.ANY),                   # w2 (manual DMA)
            pl.BlockSpec(memory_space=pl.ANY),                   # w3 (manual DMA)
            pl.BlockSpec(memory_space=pltpu.MemorySpace.VMEM),   # wh
            pl.BlockSpec(memory_space=pltpu.MemorySpace.VMEM),   # vec
        ],
        out_specs=pl.BlockSpec(memory_space=pltpu.MemorySpace.VMEM),
        scratch_shapes=[
            pltpu.VMEM((512, 256), jnp.bfloat16),                # w2 landing buffer
            pltpu.VMEM((256, 128), jnp.bfloat16),                # w3 landing buffer
            pltpu.SemaphoreType.DMA((2,)),
        ],
    )(x2, w1p, w2, w3, wh, vec)


def reference_forward(x, params):
    """Pure-JAX f32 reference of the PyTorch forward (train-mode BatchNorm)."""
    (w1, b1, g1, be1,
     w2, b2, g2, be2,
     w3, b3, g3, be3,
     wv, bv, wa, ba) = params

    def bn(h, g, b):
        mean = jnp.mean(h, axis=0, keepdims=True)
        var = jnp.mean((h - mean) ** 2, axis=0, keepdims=True)
        return g * (h - mean) / jnp.sqrt(var + 1e-5) + b

    def elu(h):
        return jnp.where(h > 0, h, jnp.exp(h) - 1.0)

    h = x.reshape(x.shape[0], -1).astype(jnp.float32)
    h = bn(elu(h @ w1 + b1), g1, be1)
    h = bn(elu(h @ w2 + b2), g2, be2)
    h = bn(elu(h @ w3 + b3), g3, be3)
    state_values = h @ wv + bv
    raw_adv = h @ wa + ba
    advantages = raw_adv - jnp.max(raw_adv, axis=1, keepdims=True)
    return state_values + advantages


if __name__ == "__main__":
    key = jax.random.PRNGKey(0)
    k_params, k_x = jax.random.split(key)
    params = init_params(k_params)
    packed = pack_params(params)

    # Rubik-cube state encoding: (batch, 20, 3) -> flattens to 60 features.
    x = jax.random.normal(k_x, (8, 20, 3), dtype=jnp.float32)

    q_values = dueling_dqn_forward(x, packed)
    jax.block_until_ready(q_values)

    assert q_values.shape == (8, 6) and q_values.dtype == jnp.float32
    assert bool(jnp.all(jnp.isfinite(q_values)))

    # Tolerance check against the full-f32 reference (bf16 weights introduce
    # ~1e-2 absolute error at these magnitudes).
    q_ref = reference_forward(x, params)
    max_err = float(jnp.max(jnp.abs(q_values - q_ref)))
    assert max_err < 8e-2, f"max abs error vs f32 reference: {max_err}"

    print("KERNEL_OK")
</pallas_src>

<mosaic_0001>
module attributes {stable_mosaic.version = 11 : i64} {
  func.func @dueling_dqn_kernel(%arg0: memref<8x64xf32, #tpu.memory_space<vmem>>, %arg1: memref<64x512xbf16, #tpu.memory_space<vmem>>, %arg2: memref<512x256xbf16, #tpu.memory_space<any>>, %arg3: memref<256x128xbf16, #tpu.memory_space<any>>, %arg4: memref<128x8xbf16, #tpu.memory_space<vmem>>, %arg5: memref<1x2816xf32, #tpu.memory_space<vmem>>, %arg6: memref<8x6xf32, #tpu.memory_space<vmem>>, %arg7: memref<512x256xbf16, #tpu.memory_space<vmem>>, %arg8: memref<256x128xbf16, #tpu.memory_space<vmem>>, %arg9: memref<2x!tpu.dma_semaphore, #tpu.memory_space<semaphore_mem>>) attributes {dimension_semantics = [], scalar_prefetch = 0 : i64, scratch_operands = 3 : i64, tpu.core_type = #tpu.core_type<tc>} {
    %c0_i32 = arith.constant 0 : i32
    %0 = tpu.memref_slice %arg9[%c0_i32] : memref<2x!tpu.dma_semaphore, #tpu.memory_space<semaphore_mem>> -> memref<1x!tpu.dma_semaphore, #tpu.memory_space<semaphore_mem>>
    %1 = tpu.memref_squeeze %0 : memref<1x!tpu.dma_semaphore, #tpu.memory_space<semaphore_mem>> -> memref<!tpu.dma_semaphore, #tpu.memory_space<semaphore_mem>>
    tpu.enqueue_dma source(%arg2 : memref<512x256xbf16, #tpu.memory_space<any>>) target(%arg7 : memref<512x256xbf16, #tpu.memory_space<vmem>>) target_semaphore(%1 : memref<!tpu.dma_semaphore, #tpu.memory_space<semaphore_mem>>)
    %c1_i32 = arith.constant 1 : i32
    %2 = tpu.memref_slice %arg9[%c1_i32] : memref<2x!tpu.dma_semaphore, #tpu.memory_space<semaphore_mem>> -> memref<1x!tpu.dma_semaphore, #tpu.memory_space<semaphore_mem>>
    %3 = tpu.memref_squeeze %2 : memref<1x!tpu.dma_semaphore, #tpu.memory_space<semaphore_mem>> -> memref<!tpu.dma_semaphore, #tpu.memory_space<semaphore_mem>>
    tpu.enqueue_dma source(%arg3 : memref<256x128xbf16, #tpu.memory_space<any>>) target(%arg8 : memref<256x128xbf16, #tpu.memory_space<vmem>>) target_semaphore(%3 : memref<!tpu.dma_semaphore, #tpu.memory_space<semaphore_mem>>)
    %c0 = arith.constant 0 : index
    %c0_0 = arith.constant 0 : index
    %4 = vector.load %arg0[%c0, %c0_0] : memref<8x64xf32, #tpu.memory_space<vmem>>, vector<8x64xf32>
    %5 = arith.truncf %4 : vector<8x64xf32> to vector<8x64xbf16>
    %c0_1 = arith.constant 0 : index
    %c0_2 = arith.constant 0 : index
    %6 = vector.load %arg1[%c0_1, %c0_2] : memref<64x512xbf16, #tpu.memory_space<vmem>>, vector<64x512xbf16>
    %cst = arith.constant dense<0.000000e+00> : vector<8x512xf32>
    %7 = tpu.matmul %5, %6, %cst {dimension_numbers = #tpu.dot_dimension_numbers<[1], [0], [0], [1], [0, 0, 1, 1], [], []>} : vector<8x64xbf16>, vector<64x512xbf16>, vector<8x512xf32> -> vector<8x512xf32>
    %c0_3 = arith.constant 0 : index
    %c0_4 = arith.constant 0 : index
    %8 = vector.load %arg5[%c0_3, %c0_4] : memref<1x2816xf32, #tpu.memory_space<vmem>>, vector<1x512xf32>
    %9 = vector.broadcast %8 : vector<1x512xf32> to vector<8x512xf32>
    %10 = arith.addf %7, %9 : vector<8x512xf32>
    %cst_5 = arith.constant 0.000000e+00 : f32
    %11 = vector.broadcast %cst_5 : f32 to vector<8x512xf32>
    %12 = arith.cmpf ogt, %10, %11 : vector<8x512xf32>
    %13 = math.exp %10 : vector<8x512xf32>
    %cst_6 = arith.constant 1.000000e+00 : f32
    %14 = vector.broadcast %cst_6 : f32 to vector<8x512xf32>
    %15 = arith.subf %13, %14 : vector<8x512xf32>
    %16 = arith.select %12, %10, %15 : vector<8x512xi1>, vector<8x512xf32>
    %c0_7 = arith.constant 0 : index
    %c512 = arith.constant 512 : index
    %17 = vector.load %arg5[%c0_7, %c512] : memref<1x2816xf32, #tpu.memory_space<vmem>>, vector<1x512xf32>
    %c0_8 = arith.constant 0 : index
    %c1024 = arith.constant 1024 : index
    %18 = vector.load %arg5[%c0_8, %c1024] : memref<1x2816xf32, #tpu.memory_space<vmem>>, vector<1x512xf32>
    %cst_9 = arith.constant dense<0.000000e+00> : vector<512xf32>
    %19 = vector.multi_reduction <add>, %16, %cst_9 [0] : vector<8x512xf32> to vector<512xf32>
    %20 = vector.shape_cast %19 : vector<512xf32> to vector<1x512xf32>
    %cst_10 = arith.constant 8.000000e+00 : f32
    %21 = vector.broadcast %cst_10 : f32 to vector<1x512xf32>
    %22 = arith.divf %20, %21 : vector<1x512xf32>
    %23 = vector.broadcast %22 : vector<1x512xf32> to vector<8x512xf32>
    %24 = arith.subf %16, %23 : vector<8x512xf32>
    %25 = arith.mulf %24, %24 : vector<8x512xf32>
    %cst_11 = arith.constant dense<0.000000e+00> : vector<512xf32>
    %26 = vector.multi_reduction <add>, %25, %cst_11 [0] : vector<8x512xf32> to vector<512xf32>
    %27 = vector.shape_cast %26 : vector<512xf32> to vector<1x512xf32>
    %cst_12 = arith.constant 8.000000e+00 : f32
    %28 = vector.broadcast %cst_12 : f32 to vector<1x512xf32>
    %29 = arith.divf %27, %28 : vector<1x512xf32>
    %cst_13 = arith.constant 9.99999974E-6 : f32
    %30 = vector.broadcast %cst_13 : f32 to vector<1x512xf32>
    %31 = arith.addf %29, %30 : vector<1x512xf32>
    %32 = math.rsqrt %31 : vector<1x512xf32>
    %33 = arith.mulf %17, %32 : vector<1x512xf32>
    %34 = vector.broadcast %33 : vector<1x512xf32> to vector<8x512xf32>
    %35 = arith.mulf %24, %34 : vector<8x512xf32>
    %36 = vector.broadcast %18 : vector<1x512xf32> to vector<8x512xf32>
    %37 = arith.addf %35, %36 : vector<8x512xf32>
    %c0_i32_14 = arith.constant 0 : i32
    %38 = tpu.memref_slice %arg9[%c0_i32_14] : memref<2x!tpu.dma_semaphore, #tpu.memory_space<semaphore_mem>> -> memref<1x!tpu.dma_semaphore, #tpu.memory_space<semaphore_mem>>
    %39 = tpu.memref_squeeze %38 : memref<1x!tpu.dma_semaphore, #tpu.memory_space<semaphore_mem>> -> memref<!tpu.dma_semaphore, #tpu.memory_space<semaphore_mem>>
    tpu.wait_dma2 semaphore(%39 : memref<!tpu.dma_semaphore, #tpu.memory_space<semaphore_mem>>) src(%arg2 : memref<512x256xbf16, #tpu.memory_space<any>>) dst(%arg7 : memref<512x256xbf16, #tpu.memory_space<vmem>>)
    %40 = arith.truncf %37 : vector<8x512xf32> to vector<8x512xbf16>
    %c0_15 = arith.constant 0 : index
    %c0_16 = arith.constant 0 : index
    %41 = vector.load %arg7[%c0_15, %c0_16] : memref<512x256xbf16, #tpu.memory_space<vmem>>, vector<512x256xbf16>
    %cst_17 = arith.constant dense<0.000000e+00> : vector<8x256xf32>
    %42 = tpu.matmul %40, %41, %cst_17 {dimension_numbers = #tpu.dot_dimension_numbers<[1], [0], [0], [1], [0, 0, 1, 1], [], []>} : vector<8x512xbf16>, vector<512x256xbf16>, vector<8x256xf32> -> vector<8x256xf32>
    %c0_18 = arith.constant 0 : index
    %c1536 = arith.constant 1536 : index
    %43 = vector.load %arg5[%c0_18, %c1536] : memref<1x2816xf32, #tpu.memory_space<vmem>>, vector<1x256xf32>
    %44 = vector.broadcast %43 : vector<1x256xf32> to vector<8x256xf32>
    %45 = arith.addf %42, %44 : vector<8x256xf32>
    %cst_19 = arith.constant 0.000000e+00 : f32
    %46 = vector.broadcast %cst_19 : f32 to vector<8x256xf32>
    %47 = arith.cmpf ogt, %45, %46 : vector<8x256xf32>
    %48 = math.exp %45 : vector<8x256xf32>
    %cst_20 = arith.constant 1.000000e+00 : f32
    %49 = vector.broadcast %cst_20 : f32 to vector<8x256xf32>
    %50 = arith.subf %48, %49 : vector<8x256xf32>
    %51 = arith.select %47, %45, %50 : vector<8x256xi1>, vector<8x256xf32>
    %c0_21 = arith.constant 0 : index
    %c1792 = arith.constant 1792 : index
    %52 = vector.load %arg5[%c0_21, %c1792] : memref<1x2816xf32, #tpu.memory_space<vmem>>, vector<1x256xf32>
    %c0_22 = arith.constant 0 : index
    %c2048 = arith.constant 2048 : index
    %53 = vector.load %arg5[%c0_22, %c2048] : memref<1x2816xf32, #tpu.memory_space<vmem>>, vector<1x256xf32>
    %cst_23 = arith.constant dense<0.000000e+00> : vector<256xf32>
    %54 = vector.multi_reduction <add>, %51, %cst_23 [0] : vector<8x256xf32> to vector<256xf32>
    %55 = vector.shape_cast %54 : vector<256xf32> to vector<1x256xf32>
    %cst_24 = arith.constant 8.000000e+00 : f32
    %56 = vector.broadcast %cst_24 : f32 to vector<1x256xf32>
    %57 = arith.divf %55, %56 : vector<1x256xf32>
    %58 = vector.broadcast %57 : vector<1x256xf32> to vector<8x256xf32>
    %59 = arith.subf %51, %58 : vector<8x256xf32>
    %60 = arith.mulf %59, %59 : vector<8x256xf32>
    %cst_25 = arith.constant dense<0.000000e+00> : vector<256xf32>
    %61 = vector.multi_reduction <add>, %60, %cst_25 [0] : vector<8x256xf32> to vector<256xf32>
    %62 = vector.shape_cast %61 : vector<256xf32> to vector<1x256xf32>
    %cst_26 = arith.constant 8.000000e+00 : f32
    %63 = vector.broadcast %cst_26 : f32 to vector<1x256xf32>
    %64 = arith.divf %62, %63 : vector<1x256xf32>
    %cst_27 = arith.constant 9.99999974E-6 : f32
    %65 = vector.broadcast %cst_27 : f32 to vector<1x256xf32>
    %66 = arith.addf %64, %65 : vector<1x256xf32>
    %67 = math.rsqrt %66 : vector<1x256xf32>
    %68 = arith.mulf %52, %67 : vector<1x256xf32>
    %69 = vector.broadcast %68 : vector<1x256xf32> to vector<8x256xf32>
    %70 = arith.mulf %59, %69 : vector<8x256xf32>
    %71 = vector.broadcast %53 : vector<1x256xf32> to vector<8x256xf32>
    %72 = arith.addf %70, %71 : vector<8x256xf32>
    %c1_i32_28 = arith.constant 1 : i32
    %73 = tpu.memref_slice %arg9[%c1_i32_28] : memref<2x!tpu.dma_semaphore, #tpu.memory_space<semaphore_mem>> -> memref<1x!tpu.dma_semaphore, #tpu.memory_space<semaphore_mem>>
    %74 = tpu.memref_squeeze %73 : memref<1x!tpu.dma_semaphore, #tpu.memory_space<semaphore_mem>> -> memref<!tpu.dma_semaphore, #tpu.memory_space<semaphore_mem>>
    tpu.wait_dma2 semaphore(%74 : memref<!tpu.dma_semaphore, #tpu.memory_space<semaphore_mem>>) src(%arg3 : memref<256x128xbf16, #tpu.memory_space<any>>) dst(%arg8 : memref<256x128xbf16, #tpu.memory_space<vmem>>)
    %75 = arith.truncf %72 : vector<8x256xf32> to vector<8x256xbf16>
    %c0_29 = arith.constant 0 : index
    %c0_30 = arith.constant 0 : index
    %76 = vector.load %arg8[%c0_29, %c0_30] : memref<256x128xbf16, #tpu.memory_space<vmem>>, vector<256x128xbf16>
    %cst_31 = arith.constant dense<0.000000e+00> : vector<8x128xf32>
    %77 = tpu.matmul %75, %76, %cst_31 {dimension_numbers = #tpu.dot_dimension_numbers<[1], [0], [0], [1], [0, 0, 1, 1], [], []>} : vector<8x256xbf16>, vector<256x128xbf16>, vector<8x128xf32> -> vector<8x128xf32>
    %c0_32 = arith.constant 0 : index
    %c2304 = arith.constant 2304 : index
    %78 = vector.load %arg5[%c0_32, %c2304] : memref<1x2816xf32, #tpu.memory_space<vmem>>, vector<1x128xf32>
    %79 = vector.broadcast %78 : vector<1x128xf32> to vector<8x128xf32>
    %80 = arith.addf %77, %79 : vector<8x128xf32>
    %cst_33 = arith.constant 0.000000e+00 : f32
    %81 = vector.broadcast %cst_33 : f32 to vector<8x128xf32>
    %82 = arith.cmpf ogt, %80, %81 : vector<8x128xf32>
    %83 = math.exp %80 : vector<8x128xf32>
    %cst_34 = arith.constant 1.000000e+00 : f32
    %84 = vector.broadcast %cst_34 : f32 to vector<8x128xf32>
    %85 = arith.subf %83, %84 : vector<8x128xf32>
    %86 = arith.select %82, %80, %85 : vector<8x128xi1>, vector<8x128xf32>
    %c0_35 = arith.constant 0 : index
    %c2432 = arith.constant 2432 : index
    %87 = vector.load %arg5[%c0_35, %c2432] : memref<1x2816xf32, #tpu.memory_space<vmem>>, vector<1x128xf32>
    %c0_36 = arith.constant 0 : index
    %c2560 = arith.constant 2560 : index
    %88 = vector.load %arg5[%c0_36, %c2560] : memref<1x2816xf32, #tpu.memory_space<vmem>>, vector<1x128xf32>
    %cst_37 = arith.constant dense<0.000000e+00> : vector<128xf32>
    %89 = vector.multi_reduction <add>, %86, %cst_37 [0] : vector<8x128xf32> to vector<128xf32>
    %90 = vector.shape_cast %89 : vector<128xf32> to vector<1x128xf32>
    %cst_38 = arith.constant 8.000000e+00 : f32
    %91 = vector.broadcast %cst_38 : f32 to vector<1x128xf32>
    %92 = arith.divf %90, %91 : vector<1x128xf32>
    %93 = vector.broadcast %92 : vector<1x128xf32> to vector<8x128xf32>
    %94 = arith.subf %86, %93 : vector<8x128xf32>
    %95 = arith.mulf %94, %94 : vector<8x128xf32>
    %cst_39 = arith.constant dense<0.000000e+00> : vector<128xf32>
    %96 = vector.multi_reduction <add>, %95, %cst_39 [0] : vector<8x128xf32> to vector<128xf32>
    %97 = vector.shape_cast %96 : vector<128xf32> to vector<1x128xf32>
    %cst_40 = arith.constant 8.000000e+00 : f32
    %98 = vector.broadcast %cst_40 : f32 to vector<1x128xf32>
    %99 = arith.divf %97, %98 : vector<1x128xf32>
    %cst_41 = arith.constant 9.99999974E-6 : f32
    %100 = vector.broadcast %cst_41 : f32 to vector<1x128xf32>
    %101 = arith.addf %99, %100 : vector<1x128xf32>
    %102 = math.rsqrt %101 : vector<1x128xf32>
    %103 = arith.mulf %87, %102 : vector<1x128xf32>
    %104 = vector.broadcast %103 : vector<1x128xf32> to vector<8x128xf32>
    %105 = arith.mulf %94, %104 : vector<8x128xf32>
    %106 = vector.broadcast %88 : vector<1x128xf32> to vector<8x128xf32>
    %107 = arith.addf %105, %106 : vector<8x128xf32>
    %108 = arith.truncf %107 : vector<8x128xf32> to vector<8x128xbf16>
    %c0_42 = arith.constant 0 : index
    %c0_43 = arith.constant 0 : index
    %109 = vector.load %arg4[%c0_42, %c0_43] : memref<128x8xbf16, #tpu.memory_space<vmem>>, vector<128x8xbf16>
    %cst_44 = arith.constant dense<0.000000e+00> : vector<8x8xf32>
    %110 = tpu.matmul %108, %109, %cst_44 {dimension_numbers = #tpu.dot_dimension_numbers<[1], [0], [0], [1], [0, 0, 1, 1], [], []>} : vector<8x128xbf16>, vector<128x8xbf16>, vector<8x8xf32> -> vector<8x8xf32>
    %c0_45 = arith.constant 0 : index
    %c2688 = arith.constant 2688 : index
    %111 = vector.load %arg5[%c0_45, %c2688] : memref<1x2816xf32, #tpu.memory_space<vmem>>, vector<1x8xf32>
    %112 = vector.broadcast %111 : vector<1x8xf32> to vector<8x8xf32>
    %113 = arith.addf %110, %112 : vector<8x8xf32>
    %114 = vector.extract_strided_slice %113 {offsets = [0, 0], sizes = [8, 1], strides = [1, 1]} : vector<8x8xf32> to vector<8x1xf32>
    %115 = vector.extract_strided_slice %113 {offsets = [0, 1], sizes = [8, 6], strides = [1, 1]} : vector<8x8xf32> to vector<8x6xf32>
    %cst_46 = arith.constant dense<0xFF800000> : vector<8xf32>
    %116 = vector.multi_reduction <maximumf>, %115, %cst_46 [1] : vector<8x6xf32> to vector<8xf32>
    %117 = vector.shape_cast %116 : vector<8xf32> to vector<8x1xf32>
    %118 = vector.broadcast %117 : vector<8x1xf32> to vector<8x6xf32>
    %119 = arith.subf %115, %118 : vector<8x6xf32>
    %120 = vector.broadcast %114 : vector<8x1xf32> to vector<8x6xf32>
    %121 = arith.addf %120, %119 : vector<8x6xf32>
    %c0_47 = arith.constant 0 : index
    %c0_48 = arith.constant 0 : index
    %122 = vector.load %arg6[%c0_47, %c0_48] : memref<8x6xf32, #tpu.memory_space<vmem>>, vector<8x6xf32>
    tpu.vector_store %arg6[%c0_47, %c0_48], %121 {strides = array<i32>} : memref<8x6xf32, #tpu.memory_space<vmem>>, vector<8x6xf32>,
    return
  }
}

</mosaic_0001>

<bundles_post_ra>
// kernel: dueling_dqn_forward.1
= control target key start
LH: loop header
LB: loop body
LE: loop exit
PB: predicated region body
PF: predicated region fallthrough
CT: control target
= control target key end

     0   :  { %11 = vsyncpa [#allocation6], 0  ;;  %s1978_s28 = smov [#allocation2]   ;;  %s2316_s0 = inlined_call_operand.vmem [shape: f32[8,64], index: 0, kind: input, shape index: {}]   ;;  %s2317_s1 = inlined_call_operand.vmem [shape: bf16[64,512], index: 1, kind: input, shape index: {}]   ;;  %s2318_s2 = inlined_call_operand.hbm [shape: bf16[512,256], index: 2, kind: input, shape index: {}]   ;;  %s2319_s3 = inlined_call_operand.vmem [shape: bf16[256,128], index: 3, kind: input, shape index: {}]   ;;  %s2320_s4 = inlined_call_operand.vmem [shape: bf16[128,8], index: 4, kind: input, shape index: {}]   ;;  %s2321_s5 = inlined_call_operand.vmem [shape: f32[1,2816], index: 5, kind: input, shape index: {}]   ;;  %s2322_s6 = inlined_call_operand.hbm [shape: f32[8,6], index: 6, kind: output, shape index: {}]  }
   0x1   :  { %s28_s23 = sshll.u32 %s2318_s2, 4  ;;  %v45_v0 = vld [vmem:[%s2319_s3] sm:$0xff]  ;;  %v47_v1 = vld [vmem:[%s2319_s3 + $0x8] sm:$0xff]  ;;  %s30_s29 = sshll.u32 %s1978_s28, 4  ;;  %v49_v2 = vld [vmem:[%s2319_s3 + $0x10] sm:$0xff]  ;;  %s29_s23 = int_to_ptr.hbm [resolvable:$true] %s28_s23  ;;  %s31_s29 = int_to_ptr.vmem [resolvable:$true] %s30_s29 }
   0x2   :  { %46 = vst [vmem:[#allocation3 + $0x30] sm:$0xff] %v45_v0  ;;  %v51_v3 = vld [vmem:[%s2319_s3 + $0x18] sm:$0xff]  ;;  %v53_v4 = vld [vmem:[%s2319_s3 + $0x20] sm:$0xff]  ;;  %33 = dma.hbm_to_vmem [thread:$0]  %s29_s23, 8192, %s31_s29, [#allocation4]  ;;  %v55_v5 = vld [vmem:[%s2319_s3 + $0x28] sm:$0xff] }
   0x3   :  { %48 = vst [vmem:[#allocation3] sm:$0xff] %v47_v1  ;;  %v57_v6 = vld [vmem:[%s2319_s3 + $0x30] sm:$0xff]  ;;  %v59_v7 = vld [vmem:[%s2319_s3 + $0x38] sm:$0xff]  ;;  %v61_v8 = vld [vmem:[%s2319_s3 + $0x40] sm:$0xff] }
   0x4   :  { %50 = vst [vmem:[#allocation3 + $0x58] sm:$0xff] %v49_v2  ;;  %v63_v9 = vld [vmem:[%s2319_s3 + $0x48] sm:$0xff]  ;;  %v65_v10 = vld [vmem:[%s2319_s3 + $0x50] sm:$0xff]  ;;  %v67_v11 = vld [vmem:[%s2319_s3 + $0x58] sm:$0xff] }
   0x5   :  { %52 = vst [vmem:[#allocation3 + $0x18] sm:$0xff] %v51_v3  ;;  %v69_v12 = vld [vmem:[%s2319_s3 + $0x60] sm:$0xff]  ;;  %v71_v13 = vld [vmem:[%s2319_s3 + $0x68] sm:$0xff]  ;;  %v73_v14 = vld [vmem:[%s2319_s3 + $0x70] sm:$0xff] }
   0x6   :  { %54 = vst [vmem:[#allocation3 + $0x50] sm:$0xff] %v53_v4  ;;  %v75_v15 = vld [vmem:[%s2319_s3 + $0x78] sm:$0xff] }
   0x7   :  { %56 = vst [vmem:[#allocation3 + $0x68] sm:$0xff] %v55_v5 }
   0x8   :  { %58 = vst [vmem:[#allocation3 + $0x8] sm:$0xff] %v57_v6 }
   0x9   :  { %60 = vst [vmem:[#allocation3 + $0x48] sm:$0xff] %v59_v7 }
   0xa   :  { %62 = vst [vmem:[#allocation3 + $0x40] sm:$0xff] %v61_v8 }
   0xb   :  { %64 = vst [vmem:[#allocation3 + $0x20] sm:$0xff] %v63_v9 }
   0xc   :  { %66 = vst [vmem:[#allocation3 + $0x10] sm:$0xff] %v65_v10 }
   0xd   :  { %68 = vst [vmem:[#allocation3 + $0x38] sm:$0xff] %v67_v11 }
   0xe   :  { %70 = vst [vmem:[#allocation3 + $0x60] sm:$0xff] %v69_v12 }
   0xf   :  { %72 = vst [vmem:[#allocation3 + $0x70] sm:$0xff] %v71_v13 }
  0x10   :  { %74 = vst [vmem:[#allocation3 + $0x78] sm:$0xff] %v73_v14 }
  0x11   :  { %76 = vst [vmem:[#allocation3 + $0x28] sm:$0xff] %v75_v15 }
  0x12   :  { %82 = vsyncadd [#allocation4 + $0x1], 2048  ;;  %v1402_v16 = vld [vmem:[%s2317_s1 + $0x60] sm:$0xf]  ;;  %v1795_v17 = vld [vmem:[%s2317_s1 + $0x6c] sm:$0xf0] }
  0x13   :  { %v1403_v18 = vor.u32 %v1795_v17, %v1402_v16  ;;  %v1793_v19 = vld [vmem:[%s2317_s1 + $0x64] sm:$0xf]  ;;  %v1404_v20 = vld [vmem:[%s2317_s1 + $0x70] sm:$0xf0]  ;;  %v1410_v21 = vld [vmem:[%s2317_s1 + $0x68] sm:$0xf] }
  0x14   :  { %v1407_v22 = vor.u32 %v1793_v19, %v1404_v20  ;;  %v1796_v23 = vld [vmem:[%s2317_s1 + $0x74] sm:$0xf0]  ;;  %v1386_v24 = vld [vmem:[%s2317_s1 + $0x40] sm:$0xf]  ;;  %v1791_v25 = vld [vmem:[%s2317_s1 + $0x4c] sm:$0xf0] }
  0x15   :  { %199 = vmatpush.bf16.msra.mxu3 %v1403_v18  ;;  %v1411_v26 = vor.u32 %v1796_v23, %v1410_v21  ;;  %v1387_v27 = vor.u32 %v1791_v25, %v1386_v24  ;;  %v1789_v28 = vld [vmem:[%s2317_s1 + $0x44] sm:$0xf]  ;;  %v1388_v29 = vld [vmem:[%s2317_s1 + $0x50] sm:$0xf0]  ;;  %v1394_v30 = vld [vmem:[%s2317_s1 + $0x48] sm:$0xf] }
  0x16   :  { %212 = vmatpush.bf16.msra.mxu1 %v1407_v22  ;;  %v1391_v31 = vor.u32 %v1789_v28, %v1388_v29  ;;  %v1792_v32 = vld [vmem:[%s2317_s1 + $0x54] sm:$0xf0]  ;;  %v1370_v33 = vld [vmem:[%s2317_s1 + $0x20] sm:$0xf]  ;;  %v1787_v34 = vld [vmem:[%s2317_s1 + $0x2c] sm:$0xf0] }
  0x17   :  { %225 = vmatpush.bf16.msra.mxu2 %v1411_v26  ;;  %v1395_v35 = vor.u32 %v1792_v32, %v1394_v30  ;;  %v1785_v36 = vld [vmem:[%s2317_s1 + $0x24] sm:$0xf]  ;;  %v1372_v37 = vld [vmem:[%s2317_s1 + $0x30] sm:$0xf0]  ;;  %v1378_v38 = vld [vmem:[%s2317_s1 + $0x28] sm:$0xf]  ;;  %v1371_v40 = vor.u32 %v1787_v34, %v1370_v33 }
  0x18   :  { %v1788_v39 = vld [vmem:[%s2317_s1 + $0x34] sm:$0xf0]  ;;  %v1375_v41 = vor.u32 %v1785_v36, %v1372_v37  ;;  %v1354_v42 = vld [vmem:[%s2317_s1] sm:$0xf]  ;;  %v1783_v43 = vld [vmem:[%s2317_s1 + $0xc] sm:$0xf0] }
  0x19   :  { %200 = vmatpush.bf16.msra.mxu3 %v1387_v27  ;;  %v1781_v44 = vld [vmem:[%s2317_s1 + $0x4] sm:$0xf]  ;;  %v1379_v45 = vor.u32 %v1788_v39, %v1378_v38  ;;  %v1356_v46 = vld [vmem:[%s2317_s1 + $0x10] sm:$0xf0]  ;;  %v1794_v47 = vld [vmem:[%s2317_s1 + $0x6c] sm:$0xf]  ;;  %v1355_v51 = vor.u32 %v1783_v43, %v1354_v42 }
  0x1a   :  { %213 = vmatpush.bf16.msra.mxu1 %v1391_v31  ;;  %v1412_v48 = vld [vmem:[%s2317_s1 + $0x78] sm:$0xf0]  ;;  %v1362_v49 = vld [vmem:[%s2317_s1 + $0x8] sm:$0xf]  ;;  %v1784_v50 = vld [vmem:[%s2317_s1 + $0x14] sm:$0xf0]  ;;  %v1359_v53 = vor.u32 %v1781_v44, %v1356_v46 }
  0x1b   :  { %226 = vmatpush.bf16.msra.mxu2 %v1395_v35  ;;  %v83_v52 = vld [vmem:[%s2316_s0] sm:$0xff]  ;;  %v1415_v54 = vor.u32 %v1794_v47, %v1412_v48  ;;  %v1363_v55 = vor.u32 %v1784_v50, %v1362_v49  ;;  %v1790_v56 = vld [vmem:[%s2317_s1 + $0x4c] sm:$0xf]  ;;  %v1396_v57 = vld [vmem:[%s2317_s1 + $0x58] sm:$0xf0]  ;;  %vm191_vm0 = vcmask 523264  }
  0x1c   :  { %v84_v58 = vpack.c.bf16 %v83_v52, %v83_v52  ;;  %v1399_v59 = vor.u32 %v1790_v56, %v1396_v57  ;;  %v1786_v60 = vld [vmem:[%s2317_s1 + $0x2c] sm:$0xf]  ;;  %v1380_v61 = vld [vmem:[%s2317_s1 + $0x38] sm:$0xf0]  ;;  %v101_v2 = vld [vmem:[%s2321_s5] sm:$0xf] }
  0x1d   :  { %201 = vmatpush.bf16.msra.mxu3 %v1371_v40  ;;  %v1383_v62 = vor.u32 %v1786_v60, %v1380_v61  ;;  %v1782_v63 = vld [vmem:[%s2317_s1 + $0xc] sm:$0xf]  ;;  %v1364_v0 = vld [vmem:[%s2317_s1 + $0x18] sm:$0xf0]  ;;  %v104_v3 = vperm.slane %v101_v2, 1  ;;  %v1979_v4 = vmov 8.0  }
  0x1e   :  { %214 = vmatpush.bf16.msra.mxu1 %v1375_v41  ;;  %v1367_v1 = vor.u32 %v1782_v63, %v1364_v0  ;;  %1890 = vrcp.f32 %v1979_v4  ;;  %v103_v7 = vperm.slane %v101_v2, 0  ;;  %v105_v9 = vperm.slane %v101_v2, 2 }
  0x1f   :  { %227 = vmatpush.bf16.msra.mxu2 %v1379_v45  ;;  %v106_v31 = vperm.slane %v101_v2, 3 }
  0x21   :  { %202 = vmatpush.bf16.msra.mxu3 %v1355_v51 }
  0x22   :  { %215 = vmatpush.bf16.msra.mxu1 %v1359_v53 }
  0x23   :  { %228 = vmatpush.bf16.msra.mxu2 %v1363_v55 }
  0x24   :  { %1416 = vmatmul.msk.bf16.vlgmr.msra.gmra.mxu3 %vm191_vm0, %v84_v58  ;;  %v1891_v10 = vpop.eup %1890 }
  0x25   :  { %238 = vmatpush.bf16.msrb.mxu3 %v1415_v54  ;;  %1417 = vmatmul.msk.bf16.vlgmr.msra.gmra.mxu1 %vm191_vm0, %v84_v58  ;;  %v294_v14 = vmul.f32 8.0, %v1891_v10  ;;  %vm298_vm4 = vweird.f32 %v1891_v10 }
  0x26   :  { %1418 = vmatmul.msk.bf16.vlgmr.msra.gmra.mxu2 %vm191_vm0, %v84_v58 }
  0x27   :  { %v295_v21 = vsub.f32 1.0, %v294_v14 }
  0x29   :  { %239 = vmatpush.bf16.msrb.mxu3 %v1399_v59  ;;  %v296_v27 = vmul.f32 %v1891_v10, %v295_v21 }
  0x2b   :  { %v297_v35 = vadd.f32 %v1891_v10, %v296_v27 }
  0x2d   :  { %240 = vmatpush.bf16.msrb.mxu3 %v1383_v62  ;;  %v2175_v44 = vsel %vm298_vm4, %v1891_v10, %v297_v35  ;;  %vm395_vm4 = vcmask 1041408  }
  0x31   :  { %241 = vmatpush.bf16.msrb.mxu3 %v1367_v1 }
  0x34   :  { %1419 = vmatmul.msk.bf16.vlgmr.msrb.gmra.mxu3 %vm191_vm0, %v84_v58 }
  0xa2   :  { %v217_v5 = vpop.f32.mrf.mxu1 }
  0xa3   :  { %v218_v6 = vadd.f32 %v217_v5, %v104_v3 }
  0xa5   :  { %v253_v8 = vmul.f32 1.442695, %v218_v6  ;;  %vm248_vm1 = vcmp.gt.f32.partialorder %v218_v6, 0.0 }
  0xa7   :  { %1892 = vpow2.f32 %v253_v8  ;;  %v204_v11 = vpop.f32.mrf.mxu3 }
  0xa8   :  { %v205_v12 = vadd.f32 %v204_v11, %v103_v7 }
  0xa9   :  { %v230_v13 = vpop.f32.mrf.mxu2 }
  0xaa   :  { %v251_v15 = vmul.f32 1.442695, %v205_v12  ;;  %v231_v16 = vadd.f32 %v230_v13, %v105_v9  ;;  %v219_v17 = vpop.f32.mrf.mxu1  ;;  %vm247_vm2 = vcmp.gt.f32.partialorder %v205_v12, 0.0 }
  0xac   :  { %1894 = vpow2.f32 %v251_v15  ;;  %v255_v18 = vmul.f32 1.442695, %v231_v16  ;;  %vm249_vm3 = vcmp.gt.f32.partialorder %v231_v16, 0.0 }
  0xad   :  { %v1893_v19 = vpop.eup %1892 }
  0xae   :  { %v1421_v20 = vadd.f32 -1.0, %v1893_v19  ;;  %1896 = vpow2.f32 %v255_v18 }
  0xaf   :  { %v206_v22 = vpop.f32.mrf.mxu3 }
  0xb0   :  { %v264_v23 = vsel %vm248_vm1, %v218_v6, %v1421_v20 }
  0xb1   :  { %v275_v24 = vrot.slane %v264_v23, 4  ;;  %v232_v25 = vpop.f32.mrf.mxu2 }
  0xb2   :  { %v1895_v26 = vpop.eup %1894 }
  0xb3   :  { %v276_v28 = vadd.f32 %v275_v24, %v264_v23  ;;  %v1420_v29 = vadd.f32 -1.0, %v1895_v26 }
  0xb4   :  { %v1897_v30 = vpop.eup %1896 }
  0xb5   :  { %v277_v32 = vrot.slane %v276_v28, 2  ;;  %v263_v33 = vsel %vm247_vm2, %v205_v12, %v1420_v29  ;;  %v1422_v34 = vadd.f32 -1.0, %v1897_v30  ;;  %vm391_vm2 = vcmask 1040384  }
  0xb6   :  { %v269_v36 = vrot.slane %v263_v33, 4 }
  0xb7   :  { %v278_v37 = vadd.f32 %v277_v32, %v276_v28  ;;  %v265_v38 = vsel %vm249_vm3, %v231_v16, %v1422_v34  ;;  %v243_v39 = vpop.f32.mrf.mxu3  ;;  %vm393_vm3 = vcmask 1042434  }
  0xb8   :  { %v270_v40 = vadd.f32 %v269_v36, %v263_v33  ;;  %v281_v41 = vrot.slane %v265_v38, 4  ;;  %v244_v42 = vadd.f32 %v243_v39, %v106_v31 }
  0xb9   :  { %v279_v43 = vrot.slane %v278_v37, 1 }
  0xba   :  { %v271_v45 = vrot.slane %v270_v40, 2  ;;  %v282_v46 = vadd.f32 %v281_v41, %v265_v38  ;;  %v257_v47 = vmul.f32 1.442695, %v244_v42  ;;  %vm250_vm5 = vcmp.gt.f32.partialorder %v244_v42, 0.0 }
  0xbb   :  { %v280_v48 = vadd.f32 %v279_v43, %v278_v37 }
  0xbc   :  { %v272_v49 = vadd.f32 %v271_v45, %v270_v40  ;;  %v283_v50 = vrot.slane %v282_v46, 2  ;;  %1898 = vpow2.f32 %v257_v47 }
  0xbd   :  { %v301_v51 = vmul.f32 %v2175_v44, %v280_v48 }
  0xbe   :  { %v273_v52 = vrot.slane %v272_v49, 1  ;;  %v284_v53 = vadd.f32 %v283_v50, %v282_v46 }
  0xbf   :  { %v2178_v54 = vsub.f32 %v264_v23, %v301_v51  ;;  %v245_v55 = vpop.f32.mrf.mxu3 }
  0xc0   :  { %v274_v56 = vadd.f32 %v273_v52, %v272_v49  ;;  %v285_v57 = vrot.slane %v284_v53, 1 }
  0xc1   :  { %v309_v58 = vmul.f32 %v2178_v54, %v2178_v54 }
  0xc2   :  { %v1899_v59 = vpop.eup %1898  ;;  %v300_v60 = vmul.f32 %v2175_v44, %v274_v56  ;;  %v286_v61 = vadd.f32 %v285_v57, %v284_v53 }
  0xc3   :  { %v318_v62 = vrot.slane %v309_v58, 4  ;;  %v1423_v63 = vadd.f32 -1.0, %v1899_v59 }
  0xc4   :  { %v2183_v0 = vsub.f32 %v263_v33, %v300_v60  ;;  %v302_v1 = vmul.f32 %v2175_v44, %v286_v61 }
  0xc5   :  { %v319_v2 = vadd.f32 %v318_v62, %v309_v58  ;;  %v266_v3 = vsel %vm250_vm5, %v244_v42, %v1423_v63 }
  0xc6   :  { %v308_v4 = vmul.f32 %v2183_v0, %v2183_v0  ;;  %v2188_v5 = vsub.f32 %v265_v38, %v302_v1  ;;  %v287_v6 = vrot.slane %v266_v3, 4 }
  0xc7   :  { %v320_v7 = vrot.slane %v319_v2, 2 }
  0xc8   :  { %v312_v8 = vrot.slane %v308_v4, 4  ;;  %v310_v9 = vmul.f32 %v2188_v5, %v2188_v5  ;;  %v288_v10 = vadd.f32 %v287_v6, %v266_v3 }
  0xc9   :  { %v321_v11 = vadd.f32 %v320_v7, %v319_v2 }
  0xca   :  { %v313_v12 = vadd.f32 %v312_v8, %v308_v4  ;;  %v324_v13 = vrot.slane %v310_v9, 4  ;;  %v289_v14 = vrot.slane %v288_v10, 2 }
  0xcb   :  { %v322_v15 = vrot.slane %v321_v11, 1 }
  0xcc   :  { %v314_v16 = vrot.slane %v313_v12, 2  ;;  %v325_v17 = vadd.f32 %v324_v13, %v310_v9  ;;  %v290_v18 = vadd.f32 %v289_v14, %v288_v10 }
  0xcd   :  { %v323_v19 = vadd.f32 %v322_v15, %v321_v11 }
  0xce   :  { %v315_v20 = vadd.f32 %v314_v16, %v313_v12  ;;  %v326_v21 = vrot.slane %v325_v17, 2  ;;  %v291_v22 = vrot.slane %v290_v18, 1 }
  0xcf   :  { %v337_v26 = vmul.f32 %v323_v19, %v2175_v44  ;;  %v267_v19 = vld [vmem:[%s2321_s5 + $0x4] sm:$0xf] }
  0xd0   :  { %v316_v23 = vrot.slane %v315_v20, 1  ;;  %v327_v24 = vadd.f32 %v326_v21, %v325_v17  ;;  %v292_v25 = vadd.f32 %v291_v22, %v290_v18 }
  0xd1   :  { %v341_v33 = vadd.f32 1e-05, %v337_v26 }
  0xd2   :  { %v317_v27 = vadd.f32 %v316_v23, %v315_v20  ;;  %v328_v28 = vrot.slane %v327_v24, 1  ;;  %v303_v29 = vmul.f32 %v2175_v44, %v292_v25  ;;  %v268_v20 = vld [vmem:[%s2321_s5 + $0x8] sm:$0xf] }
  0xd3   :  { %1900 = vrsqrt.f32 %v341_v33  ;;  %vm360_vm8 = vweird.f32 %v341_v33  ;;  %v413_v25 = vperm.slane %v268_v20, 0  ;;  %v414_v26 = vperm.slane %v268_v20, 1 }
  0xd4   :  { %v329_v30 = vadd.f32 %v328_v28, %v327_v24  ;;  %v2194_v31 = vsub.f32 %v266_v3, %v303_v29  ;;  %v336_v32 = vmul.f32 %v317_v27, %v2175_v44  ;;  %v415_v27 = vperm.slane %v268_v20, 2 }
  0xd5   :  { %v416_v28 = vperm.slane %v268_v20, 3 }
  0xd6   :  { %v338_v34 = vmul.f32 %v329_v30, %v2175_v44  ;;  %v311_v35 = vmul.f32 %v2194_v31, %v2194_v31  ;;  %v340_v38 = vadd.f32 1e-05, %v336_v32 }
  0xd8   :  { %v342_v36 = vadd.f32 1e-05, %v338_v34  ;;  %v330_v37 = vrot.slane %v311_v35, 4  ;;  %vm350_vm13 = vweird.f32 %v340_v38 }
  0xd9   :  { %v1901_v42 = vpop.eup %1900 }
  0xda   :  { %1902 = vrsqrt.f32 %v342_v36  ;;  %v331_v39 = vadd.f32 %v330_v37, %v311_v35  ;;  %v355_v48 = vmul.f32 %v1901_v42, %v341_v33  ;;  %vm361_vm6 = vweird.f32 %v1901_v42 }
  0xdb   :  { %1904 = vrsqrt.f32 %v340_v38  ;;  %vm2201_vm10 = vmor %vm360_vm8, %vm361_vm6  ;;  %vm370_vm11 = vweird.f32 %v342_v36 }
  0xdc   :  { %v332_v40 = vrot.slane %v331_v39, 2  ;;  %v356_v53 = vmul.f32 %v1901_v42, %v355_v48 }
  0xde   :  { %v333_v41 = vadd.f32 %v332_v40, %v331_v39  ;;  %v357_v57 = vmul.f32 0.5, %v356_v53 }
  0xe0   :  { %v1903_v43 = vpop.eup %1902  ;;  %v334_v45 = vrot.slane %v333_v41, 1  ;;  %v358_v61 = vsub.f32 1.5, %v357_v57 }
  0xe1   :  { %v1905_v46 = vpop.eup %1904  ;;  %v365_v49 = vmul.f32 %v1903_v43, %v342_v36  ;;  %vm371_vm7 = vweird.f32 %v1903_v43 }
  0xe2   :  { %v335_v47 = vadd.f32 %v334_v45, %v333_v41  ;;  %v345_v51 = vmul.f32 %v1905_v46, %v340_v38  ;;  %v359_v3 = vmul.f32 %v1901_v42, %v358_v61  ;;  %vm351_vm9 = vweird.f32 %v1905_v46  ;;  %vm372_vm14 = vmor %vm370_vm11, %vm371_vm7 }
  0xe3   :  { %v366_v55 = vmul.f32 %v1903_v43, %v365_v49  ;;  %vm2207_vm15 = vmor %vm350_vm13, %vm351_vm9 }
  0xe4   :  { %v339_v50 = vmul.f32 %v335_v47, %v2175_v44  ;;  %v346_v56 = vmul.f32 %v1905_v46, %v345_v51  ;;  %v363_v10 = vsel %vm2201_vm10, %v1901_v42, %v359_v3 }
  0xe5   :  { %v367_v58 = vmul.f32 0.5, %v366_v55  ;;  %v388_v16 = vrot.slane %v363_v10, 7 }
  0xe6   :  { %v343_v52 = vadd.f32 1e-05, %v339_v50  ;;  %v347_v59 = vmul.f32 0.5, %v346_v56 }
  0xe7   :  { %v368_v62 = vsub.f32 1.5, %v367_v58 }
  0xe8   :  { %1906 = vrsqrt.f32 %v343_v52  ;;  %v348_v1 = vsub.f32 1.5, %v347_v59  ;;  %vm380_vm0 = vweird.f32 %v343_v52 }
  0xe9   :  { %v369_v4 = vmul.f32 %v1903_v43, %v368_v62 }
  0xea   :  { %v349_v8 = vmul.f32 %v1905_v46, %v348_v1 }
  0xeb   :  { %v373_v12 = vsel %vm372_vm14, %v1903_v43, %v369_v4 }
  0xec   :  { %v353_v14 = vsel %vm2207_vm15, %v1905_v46, %v349_v8  ;;  %v389_v17 = vrot.slane %v373_v12, 6 }
  0xed   :  { %v392_v21 = vsel %vm391_vm2, %v353_v14, %v388_v16 }
  0xee   :  { %v1907_v60 = vpop.eup %1906 }
  0xef   :  { %v375_v63 = vmul.f32 %v1907_v60, %v343_v52  ;;  %vm381_vm12 = vweird.f32 %v1907_v60 }
  0xf0   :  { %vm382_vm1 = vmor %vm380_vm0, %vm381_vm12 }
  0xf1   :  { %v376_v2 = vmul.f32 %v1907_v60, %v375_v63 }
  0xf3   :  { %v377_v6 = vmul.f32 0.5, %v376_v2 }
  0xf5   :  { %v378_v9 = vsub.f32 1.5, %v377_v6 }
  0xf7   :  { %v379_v13 = vmul.f32 %v1907_v60, %v378_v9 }
  0xf9   :  { %v383_v15 = vsel %vm382_vm1, %v1907_v60, %v379_v13 }
  0xfa   :  { %v390_v18 = vrot.slane %v383_v15, 5 }
  0xfc   :  { %v394_v22 = vsel %vm393_vm3, %v389_v17, %v390_v18 }
  0xfd   :  { %v396_v23 = vsel %vm395_vm4, %v392_v21, %v394_v22 }
  0xfe   :  { %v398_v24 = vmul.f32 %v396_v23, %v267_v19 }
 0x100   :  { %v400_v29 = vperm.slane %v398_v24, 0  ;;  %v401_v30 = vperm.slane %v398_v24, 1  ;;  %v402_v32 = vperm.slane %v398_v24, 2  ;;  %v403_v33 = vperm.slane %v398_v24, 3 }
 0x102   :  { %v408_v34 = vmul.f32 %v400_v29, %v2183_v0  ;;  %v409_v35 = vmul.f32 %v401_v30, %v2178_v54  ;;  %v410_v36 = vmul.f32 %v402_v32, %v2188_v5  ;;  %v411_v37 = vmul.f32 %v403_v33, %v2194_v31 }
 0x104   :  { %v2224_v38 = vadd.f32 %v413_v25, %v408_v34  ;;  %v2226_v39 = vadd.f32 %v414_v26, %v409_v35  ;;  %v2228_v40 = vadd.f32 %v415_v27, %v410_v36  ;;  %v2230_v41 = vadd.f32 %v416_v28, %v411_v37 }
 0x105   :  { %1972 = dma.done.wait [#allocation4], 8192 }
 0x106   :  { %1973 = vsyncadd [#allocation4], 4294959104  ;;  %v1482_v42 = vld [vmem:[#allocation2 + $0x70] sm:$0xf]  ;;  %v1812_v43 = vld [vmem:[#allocation2 + $0x74] sm:$0xf0] }
 0x107   :  { %v1546_v45 = vld [vmem:[#allocation2 + $0xf0] sm:$0xf]  ;;  %v1483_v0 = vor.u32 %v1812_v43, %v1482_v42  ;;  %v1828_v46 = vld [vmem:[#allocation2 + $0xf4] sm:$0xf0]  ;;  %v1474_v50 = vld [vmem:[#allocation2 + $0x60] sm:$0xf] }
 0x108   :  { %v1610_v54 = vld [vmem:[#allocation2 + $0x170] sm:$0xf]  ;;  %v1844_v47 = vld [vmem:[#allocation2 + $0x174] sm:$0xf0]  ;;  %v1547_v5 = vor.u32 %v1828_v46, %v1546_v45  ;;  %v1810_v52 = vld [vmem:[#allocation2 + $0x64] sm:$0xf0] }
 0x109   :  { %v1611_v48 = vor.u32 %v1844_v47, %v1610_v54  ;;  %v1674_v31 = vld [vmem:[#allocation2 + $0x1f0] sm:$0xf]  ;;  %v1860_v49 = vld [vmem:[#allocation2 + $0x1f4] sm:$0xf0]  ;;  %823 = vmatpush.bf16.msra.mxu0 %v1483_v0  ;;  %v1538_v53 = vld [vmem:[#allocation2 + $0xe0] sm:$0xf]  ;;  %v1475_v56 = vor.u32 %v1810_v52, %v1474_v50 }
 0x10a   :  { %v1675_v51 = vor.u32 %v1860_v49, %v1674_v31  ;;  %v1826_v55 = vld [vmem:[#allocation2 + $0xe4] sm:$0xf0]  ;;  %836 = vmatpush.bf16.msrb.mxu1 %v1547_v5  ;;  %v1602_v58 = vld [vmem:[#allocation2 + $0x160] sm:$0xf]  ;;  %v1466_v63 = vld [vmem:[#allocation2 + $0x50] sm:$0xf] }
 0x10b   :  { %849 = vmatpush.bf16.msrb.mxu2 %v1611_v48  ;;  %v1539_v57 = vor.u32 %v1826_v55, %v1538_v53  ;;  %v1842_v59 = vld [vmem:[#allocation2 + $0x164] sm:$0xf0]  ;;  %v1666_v60 = vld [vmem:[#allocation2 + $0x1e0] sm:$0xf]  ;;  %v1808_v1 = vld [vmem:[#allocation2 + $0x54] sm:$0xf0] }
 0x10c   :  { %862 = vmatpush.bf16.msra.mxu3 %v1675_v51  ;;  %v1603_v61 = vor.u32 %v1842_v59, %v1602_v58  ;;  %v1858_v62 = vld [vmem:[#allocation2 + $0x1e4] sm:$0xf0]  ;;  %v1530_v3 = vld [vmem:[#allocation2 + $0xd0] sm:$0xf]  ;;  %v1824_v4 = vld [vmem:[#allocation2 + $0xd4] sm:$0xf0]  ;;  %v1467_v7 = vor.u32 %v1808_v1, %v1466_v63 }
 0x10d   :  { %v1667_v2 = vor.u32 %v1858_v62, %v1666_v60  ;;  %v1594_v6 = vld [vmem:[#allocation2 + $0x150] sm:$0xf]  ;;  %824 = vmatpush.bf16.msra.mxu0 %v1475_v56  ;;  %v1840_v8 = vld [vmem:[#allocation2 + $0x154] sm:$0xf0]  ;;  %v1531_v11 = vor.u32 %v1824_v4, %v1530_v3  ;;  %v1458_v13 = vld [vmem:[#allocation2 + $0x40] sm:$0xf] }
 0x10e   :  { %v1658_v9 = vld [vmem:[#allocation2 + $0x1d0] sm:$0xf]  ;;  %v1856_v10 = vld [vmem:[#allocation2 + $0x1d4] sm:$0xf0]  ;;  %837 = vmatpush.bf16.msrb.mxu1 %v1539_v57  ;;  %v1595_v12 = vor.u32 %v1840_v8, %v1594_v6  ;;  %v1806_v14 = vld [vmem:[#allocation2 + $0x44] sm:$0xf0] }
 0x10f   :  { %850 = vmatpush.bf16.msrb.mxu2 %v1603_v61  ;;  %v1522_v15 = vld [vmem:[#allocation2 + $0xc0] sm:$0xf]  ;;  %v1659_v16 = vor.u32 %v1856_v10, %v1658_v9  ;;  %v1822_v17 = vld [vmem:[#allocation2 + $0xc4] sm:$0xf0]  ;;  %v1459_v22 = vor.u32 %v1806_v14, %v1458_v13  ;;  %v1450_v25 = vld [vmem:[#allocation2 + $0x30] sm:$0xf] }
 0x110   :  { %863 = vmatpush.bf16.msra.mxu3 %v1667_v2  ;;  %v1586_v18 = vld [vmem:[#allocation2 + $0x140] sm:$0xf]  ;;  %v1838_v19 = vld [vmem:[#allocation2 + $0x144] sm:$0xf0]  ;;  %v1523_v23 = vor.u32 %v1822_v17, %v1522_v15  ;;  %v1804_v26 = vld [vmem:[#allocation2 + $0x34] sm:$0xf0] }
 0x111   :  { %v1650_v20 = vld [vmem:[#allocation2 + $0x1c0] sm:$0xf]  ;;  %v1854_v21 = vld [vmem:[#allocation2 + $0x1c4] sm:$0xf0]  ;;  %825 = vmatpush.bf16.msra.mxu0 %v1467_v7  ;;  %v1587_v24 = vor.u32 %v1838_v19, %v1586_v18  ;;  %v1514_v27 = vld [vmem:[#allocation2 + $0xb0] sm:$0xf]  ;;  %v1451_v35 = vor.u32 %v1804_v26, %v1450_v25 }
 0x112   :  { %838 = vmatpush.bf16.msrb.mxu1 %v1531_v11  ;;  %v1651_v28 = vor.u32 %v1854_v21, %v1650_v20  ;;  %v1820_v29 = vld [vmem:[#allocation2 + $0xb4] sm:$0xf0]  ;;  %v1578_v30 = vld [vmem:[#allocation2 + $0x130] sm:$0xf]  ;;  %v1442_v42 = vld [vmem:[#allocation2 + $0x20] sm:$0xf] }
 0x113   :  { %851 = vmatpush.bf16.msrb.mxu2 %v1595_v12  ;;  %v1836_v32 = vld [vmem:[#allocation2 + $0x134] sm:$0xf0]  ;;  %v1642_v33 = vld [vmem:[#allocation2 + $0x1b0] sm:$0xf]  ;;  %v1515_v36 = vor.u32 %v1820_v29, %v1514_v27  ;;  %v1802_v43 = vld [vmem:[#allocation2 + $0x24] sm:$0xf0] }
 0x114   :  { %864 = vmatpush.bf16.msra.mxu3 %v1659_v16  ;;  %v1852_v34 = vld [vmem:[#allocation2 + $0x1b4] sm:$0xf0]  ;;  %v1579_v37 = vor.u32 %v1836_v32, %v1578_v30  ;;  %v1506_v45 = vld [vmem:[#allocation2 + $0xa0] sm:$0xf]  ;;  %v1818_v46 = vld [vmem:[#allocation2 + $0xa4] sm:$0xf0]  ;;  %v1443_v31 = vor.u32 %v1802_v43, %v1442_v42  ;;  %v2234_v30 = vpack.c.bf16 %v2228_v40, %v2228_v40  ;;  %v2246_v40 = vpack.c.bf16 %v2226_v39, %v2226_v39 }
 0x115   :  { %826 = vmatpush.bf16.msra.mxu0 %v1459_v22  ;;  %v1643_v0 = vor.u32 %v1852_v34, %v1642_v33  ;;  %v1570_v54 = vld [vmem:[#allocation2 + $0x120] sm:$0xf]  ;;  %v1834_v47 = vld [vmem:[#allocation2 + $0x124] sm:$0xf0]  ;;  %v1507_v49 = vor.u32 %v1818_v46, %v1506_v45  ;;  %v1434_v51 = vld [vmem:[#allocation2 + $0x10] sm:$0xf] }
 0x116   :  { %839 = vmatpush.bf16.msrb.mxu1 %v1523_v23  ;;  %v1634_v5 = vld [vmem:[#allocation2 + $0x1a0] sm:$0xf]  ;;  %v1850_v48 = vld [vmem:[#allocation2 + $0x1a4] sm:$0xf0]  ;;  %v1571_v50 = vor.u32 %v1834_v47, %v1570_v54  ;;  %v1800_v52 = vld [vmem:[#allocation2 + $0x14] sm:$0xf0] }
 0x117   :  { %852 = vmatpush.bf16.msrb.mxu2 %v1587_v24  ;;  %v1498_v53 = vld [vmem:[#allocation2 + $0x90] sm:$0xf]  ;;  %v1635_v55 = vor.u32 %v1850_v48, %v1634_v5  ;;  %v1816_v56 = vld [vmem:[#allocation2 + $0x94] sm:$0xf0]  ;;  %v1435_v61 = vor.u32 %v1800_v52, %v1434_v51  ;;  %v1426_v62 = vld [vmem:[#allocation2] sm:$0xf] }
 0x118   :  { %865 = vmatpush.bf16.msra.mxu3 %v1651_v28  ;;  %v1562_v57 = vld [vmem:[#allocation2 + $0x110] sm:$0xf]  ;;  %v1832_v58 = vld [vmem:[#allocation2 + $0x114] sm:$0xf0]  ;;  %v1798_v63 = vld [vmem:[#allocation2 + $0x4] sm:$0xf0]  ;;  %v1499_v1 = vor.u32 %v1816_v56, %v1498_v53 }
 0x119   :  { %827 = vmatpush.bf16.msra.mxu0 %v1451_v35  ;;  %v1626_v59 = vld [vmem:[#allocation2 + $0x190] sm:$0xf]  ;;  %v1848_v60 = vld [vmem:[#allocation2 + $0x194] sm:$0xf0]  ;;  %v1563_v2 = vor.u32 %v1832_v58, %v1562_v57  ;;  %v1490_v3 = vld [vmem:[#allocation2 + $0x80] sm:$0xf]  ;;  %v1427_v14 = vor.u32 %v1798_v63, %v1426_v62  ;;  %v2238_v35 = vpack.c.bf16 %v2224_v38, %v2224_v38 }
 0x11a   :  { %840 = vmatpush.bf16.msrb.mxu1 %v1515_v36  ;;  %v1814_v4 = vld [vmem:[#allocation2 + $0x84] sm:$0xf0]  ;;  %v1554_v6 = vld [vmem:[#allocation2 + $0x100] sm:$0xf]  ;;  %v1627_v7 = vor.u32 %v1848_v60, %v1626_v59  ;;  %v1811_v11 = vld [vmem:[#allocation2 + $0x74] sm:$0xf]  ;;  %v2242_v36 = vpack.c.bf16 %v2230_v41, %v2230_v41 }
 0x11b   :  { %853 = vmatpush.bf16.msrb.mxu2 %v1579_v37  ;;  %v1830_v8 = vld [vmem:[#allocation2 + $0x104] sm:$0xf0]  ;;  %v1618_v9 = vld [vmem:[#allocation2 + $0x180] sm:$0xf]  ;;  %v1484_v12 = vld [vmem:[#allocation2 + $0x78] sm:$0xf0]  ;;  %v1491_v18 = vor.u32 %v1814_v4, %v1490_v3 }
 0x11c   :  { %866 = vmatpush.bf16.msra.mxu3 %v1643_v0  ;;  %v1846_v10 = vld [vmem:[#allocation2 + $0x184] sm:$0xf0]  ;;  %v1827_v13 = vld [vmem:[#allocation2 + $0xf4] sm:$0xf]  ;;  %v1548_v15 = vld [vmem:[#allocation2 + $0xf8] sm:$0xf0]  ;;  %v1555_v19 = vor.u32 %v1830_v8, %v1554_v6  ;;  %v1487_v23 = vor.u32 %v1811_v11, %v1484_v12 }
 0x11d   :  { %828 = vmatpush.bf16.msra.mxu0 %v1443_v31  ;;  %v1843_v16 = vld [vmem:[#allocation2 + $0x174] sm:$0xf]  ;;  %v1612_v17 = vld [vmem:[#allocation2 + $0x178] sm:$0xf0]  ;;  %v1619_v22 = vor.u32 %v1846_v10, %v1618_v9  ;;  %v1551_v24 = vor.u32 %v1827_v13, %v1548_v15  ;;  %v1809_v26 = vld [vmem:[#allocation2 + $0x64] sm:$0xf] }
 0x11e   :  { %841 = vmatpush.bf16.msrb.mxu1 %v1507_v49  ;;  %v1859_v20 = vld [vmem:[#allocation2 + $0x1f4] sm:$0xf]  ;;  %v1676_v21 = vld [vmem:[#allocation2 + $0x1f8] sm:$0xf0]  ;;  %v1615_v25 = vor.u32 %v1843_v16, %v1612_v17  ;;  %v1476_v27 = vld [vmem:[#allocation2 + $0x68] sm:$0xf0] }
 0x11f   :  { %854 = vmatpush.bf16.msrb.mxu2 %v1571_v50  ;;  %v1825_v28 = vld [vmem:[#allocation2 + $0xe4] sm:$0xf]  ;;  %v1679_v29 = vor.u32 %v1859_v20, %v1676_v21  ;;  %v1540_v32 = vld [vmem:[#allocation2 + $0xe8] sm:$0xf0]  ;;  %v1479_v43 = vor.u32 %v1809_v26, %v1476_v27  ;;  %v1807_v46 = vld [vmem:[#allocation2 + $0x54] sm:$0xf] }
 0x120   :  { %867 = vmatpush.bf16.msra.mxu3 %v1635_v55  ;;  %v1841_v33 = vld [vmem:[#allocation2 + $0x164] sm:$0xf]  ;;  %v1604_v34 = vld [vmem:[#allocation2 + $0x168] sm:$0xf0]  ;;  %v1543_v45 = vor.u32 %v1825_v28, %v1540_v32  ;;  %v1468_v38 = vld [vmem:[#allocation2 + $0x58] sm:$0xf0] }
 0x121   :  { %829 = vmatpush.bf16.msra.mxu0 %v1435_v61  ;;  %v1857_v37 = vld [vmem:[#allocation2 + $0x1e4] sm:$0xf]  ;;  %v1668_v42 = vld [vmem:[#allocation2 + $0x1e8] sm:$0xf0]  ;;  %v1607_v0 = vor.u32 %v1841_v33, %v1604_v34  ;;  %v1823_v54 = vld [vmem:[#allocation2 + $0xd4] sm:$0xf]  ;;  %v1471_v49 = vor.u32 %v1807_v46, %v1468_v38 }
 0x122   :  { %842 = vmatpush.bf16.msrb.mxu1 %v1499_v1  ;;  %v1671_v41 = vor.u32 %v1857_v37, %v1668_v42  ;;  %v1532_v47 = vld [vmem:[#allocation2 + $0xd8] sm:$0xf0]  ;;  %v1839_v5 = vld [vmem:[#allocation2 + $0x154] sm:$0xf]  ;;  %v1805_v52 = vld [vmem:[#allocation2 + $0x44] sm:$0xf] }
 0x123   :  { %855 = vmatpush.bf16.msrb.mxu2 %v1563_v2  ;;  %v1596_v48 = vld [vmem:[#allocation2 + $0x158] sm:$0xf0]  ;;  %v1855_v39 = vld [vmem:[#allocation2 + $0x1d4] sm:$0xf]  ;;  %v1535_v50 = vor.u32 %v1823_v54, %v1532_v47  ;;  %v1460_v53 = vld [vmem:[#allocation2 + $0x48] sm:$0xf0] }
 0x124   :  { %868 = vmatpush.bf16.msra.mxu3 %v1627_v7  ;;  %v1660_v31 = vld [vmem:[#allocation2 + $0x1d8] sm:$0xf0]  ;;  %v1599_v51 = vor.u32 %v1839_v5, %v1596_v48  ;;  %v1821_v55 = vld [vmem:[#allocation2 + $0xc4] sm:$0xf]  ;;  %v1524_v57 = vld [vmem:[#allocation2 + $0xc8] sm:$0xf0]  ;;  %v1463_v62 = vor.u32 %v1805_v52, %v1460_v53 }
 0x125   :  { %830 = vmatpush.bf16.msra.mxu0 %v1427_v14  ;;  %v1663_v56 = vor.u32 %v1855_v39, %v1660_v31  ;;  %v1837_v58 = vld [vmem:[#allocation2 + $0x144] sm:$0xf]  ;;  %v1588_v59 = vld [vmem:[#allocation2 + $0x148] sm:$0xf0]  ;;  %v1527_v63 = vor.u32 %v1821_v55, %v1524_v57  ;;  %v1803_v2 = vld [vmem:[#allocation2 + $0x34] sm:$0xf] }
 0x126   :  { %843 = vmatpush.bf16.msrb.mxu1 %v1491_v18  ;;  %v1853_v60 = vld [vmem:[#allocation2 + $0x1c4] sm:$0xf]  ;;  %v1652_v61 = vld [vmem:[#allocation2 + $0x1c8] sm:$0xf0]  ;;  %v1591_v1 = vor.u32 %v1837_v58, %v1588_v59  ;;  %v1452_v3 = vld [vmem:[#allocation2 + $0x38] sm:$0xf0] }
 0x127   :  { %856 = vmatpush.bf16.msrb.mxu2 %v1555_v19  ;;  %v1819_v4 = vld [vmem:[#allocation2 + $0xb4] sm:$0xf]  ;;  %v1655_v6 = vor.u32 %v1853_v60, %v1652_v61  ;;  %v1516_v7 = vld [vmem:[#allocation2 + $0xb8] sm:$0xf0]  ;;  %v1455_v12 = vor.u32 %v1803_v2, %v1452_v3  ;;  %v1801_v15 = vld [vmem:[#allocation2 + $0x24] sm:$0xf] }
 0x128   :  { %869 = vmatpush.bf16.msra.mxu3 %v1619_v22  ;;  %831 = vmatmul.bf16.vlgmr.msra.gmra.mxu0 %v2238_v35  ;;  %v1835_v8 = vld [vmem:[#allocation2 + $0x134] sm:$0xf]  ;;  %v1580_v9 = vld [vmem:[#allocation2 + $0x138] sm:$0xf0]  ;;  %v1519_v13 = vor.u32 %v1819_v4, %v1516_v7  ;;  %v1444_v16 = vld [vmem:[#allocation2 + $0x28] sm:$0xf0] }
 0x129   :  { %875 = vmatpush.bf16.msrb.mxu0 %v1487_v23  ;;  %844 = vmatmul.bf16.vlgmr.msrb.gmra.mxu1 %v2246_v40  ;;  %v1851_v10 = vld [vmem:[#allocation2 + $0x1b4] sm:$0xf]  ;;  %v1644_v11 = vld [vmem:[#allocation2 + $0x1b8] sm:$0xf0]  ;;  %v1583_v14 = vor.u32 %v1835_v8, %v1580_v9  ;;  %v1817_v17 = vld [vmem:[#allocation2 + $0xa4] sm:$0xf] }
 0x12a   :  { %888 = vmatpush.bf16.msra.mxu1 %v1551_v24  ;;  %857 = vmatmul.bf16.vlgmr.msrb.gmra.mxu2 %v2234_v30  ;;  %v1647_v18 = vor.u32 %v1851_v10, %v1644_v11  ;;  %v1508_v19 = vld [vmem:[#allocation2 + $0xa8] sm:$0xf0]  ;;  %v1833_v20 = vld [vmem:[#allocation2 + $0x124] sm:$0xf]  ;;  %v1447_v24 = vor.u32 %v1801_v15, %v1444_v16  ;;  %v1799_v27 = vld [vmem:[#allocation2 + $0x14] sm:$0xf] }
 0x12b   :  { %901 = vmatpush.bf16.msra.mxu2 %v1615_v25  ;;  %870 = vmatmul.bf16.vlgmr.msra.gmra.mxu3 %v2242_v36  ;;  %v1572_v21 = vld [vmem:[#allocation2 + $0x128] sm:$0xf0]  ;;  %v1849_v22 = vld [vmem:[#allocation2 + $0x1a4] sm:$0xf]  ;;  %v1511_v25 = vor.u32 %v1817_v17, %v1508_v19  ;;  %v1436_v28 = vld [vmem:[#allocation2 + $0x18] sm:$0xf0] }
 0x12c   :  { %914 = vmatpush.bf16.msrb.mxu3 %v1679_v29  ;;  %v1636_v23 = vld [vmem:[#allocation2 + $0x1a8] sm:$0xf0]  ;;  %v1575_v26 = vor.u32 %v1833_v20, %v1572_v21  ;;  %v1815_v29 = vld [vmem:[#allocation2 + $0x94] sm:$0xf]  ;;  %v1500_v33 = vld [vmem:[#allocation2 + $0x98] sm:$0xf0] }
 0x12d   :  { %876 = vmatpush.bf16.msrb.mxu0 %v1479_v43  ;;  %v1639_v32 = vor.u32 %v1849_v22, %v1636_v23  ;;  %v1831_v34 = vld [vmem:[#allocation2 + $0x114] sm:$0xf]  ;;  %v1564_v37 = vld [vmem:[#allocation2 + $0x118] sm:$0xf0]  ;;  %v1797_v38 = vld [vmem:[#allocation2 + $0x4] sm:$0xf] }
 0x12e   :  { %889 = vmatpush.bf16.msra.mxu1 %v1543_v45  ;;  %v1847_v42 = vld [vmem:[#allocation2 + $0x194] sm:$0xf]  ;;  %v1628_v43 = vld [vmem:[#allocation2 + $0x198] sm:$0xf0]  ;;  %v1439_v45 = vor.u32 %v1799_v27, %v1436_v28  ;;  %v1567_v46 = vor.u32 %v1831_v34, %v1564_v37  ;;  %v1428_v54 = vld [vmem:[#allocation2 + $0x8] sm:$0xf0] }
 0x12f   :  { %902 = vmatpush.bf16.msra.mxu2 %v1607_v0  ;;  %v1503_v0 = vor.u32 %v1815_v29, %v1500_v33  ;;  %v1631_v47 = vor.u32 %v1847_v42, %v1628_v43  ;;  %v1492_v5 = vld [vmem:[#allocation2 + $0x88] sm:$0xf0]  ;;  %v1829_v48 = vld [vmem:[#allocation2 + $0x104] sm:$0xf] }
 0x130   :  { %915 = vmatpush.bf16.msrb.mxu3 %v1671_v41  ;;  %v1813_v41 = vld [vmem:[#allocation2 + $0x84] sm:$0xf]  ;;  %v1556_v39 = vld [vmem:[#allocation2 + $0x108] sm:$0xf0] }
 0x131   :  { %877 = vmatpush.bf16.msrb.mxu0 %v1471_v49  ;;  %v1845_v31 = vld [vmem:[#allocation2 + $0x184] sm:$0xf]  ;;  %v1620_v49 = vld [vmem:[#allocation2 + $0x188] sm:$0xf0]  ;;  %v1559_v52 = vor.u32 %v1829_v48, %v1556_v39 }
 0x132   :  { %890 = vmatpush.bf16.msra.mxu1 %v1535_v50  ;;  %v1431_v50 = vor.u32 %v1797_v38, %v1428_v54  ;;  %v1623_v53 = vor.u32 %v1845_v31, %v1620_v49  ;;  %v497_v55 = vld [vmem:[%s2321_s5 + $0xc] sm:$0x3] }
 0x133   :  { %903 = vmatpush.bf16.msra.mxu2 %v1599_v51  ;;  %v1495_v51 = vor.u32 %v1813_v41, %v1492_v5  ;;  %v500_v9 = vperm.slane %v497_v55, 1 }
 0x134   :  { %916 = vmatpush.bf16.msrb.mxu3 %v1663_v56  ;;  %v499_v56 = vperm.slane %v497_v55, 0 }
 0x135   :  { %878 = vmatpush.bf16.msrb.mxu0 %v1463_v62 }
 0x136   :  { %891 = vmatpush.bf16.msra.mxu1 %v1527_v63 }
 0x137   :  { %904 = vmatpush.bf16.msra.mxu2 %v1591_v1 }
 0x138   :  { %917 = vmatpush.bf16.msrb.mxu3 %v1655_v6 }
 0x139   :  { %879 = vmatpush.bf16.msrb.mxu0 %v1455_v12 }
 0x13a   :  { %892 = vmatpush.bf16.msra.mxu1 %v1519_v13 }
 0x13b   :  { %905 = vmatpush.bf16.msra.mxu2 %v1583_v14 }
 0x13c   :  { %918 = vmatpush.bf16.msrb.mxu3 %v1647_v18 }
 0x13d   :  { %880 = vmatpush.bf16.msrb.mxu0 %v1447_v24 }
 0x13e   :  { %893 = vmatpush.bf16.msra.mxu1 %v1511_v25 }
 0x13f   :  { %906 = vmatpush.bf16.msra.mxu2 %v1575_v26 }
 0x140   :  { %919 = vmatpush.bf16.msrb.mxu3 %v1639_v32 }
 0x141   :  { %881 = vmatpush.bf16.msrb.mxu0 %v1439_v45 }
 0x142   :  { %894 = vmatpush.bf16.msra.mxu1 %v1503_v0 }
 0x143   :  { %907 = vmatpush.bf16.msra.mxu2 %v1567_v46 }
 0x144   :  { %920 = vmatpush.bf16.msrb.mxu3 %v1631_v47 }
 0x145   :  { %882 = vmatpush.bf16.msrb.mxu0 %v1431_v50 }
 0x146   :  { %895 = vmatpush.bf16.msra.mxu1 %v1495_v51 }
 0x147   :  { %908 = vmatpush.bf16.msra.mxu2 %v1559_v52 }
 0x148   :  { %921 = vmatpush.bf16.msrb.mxu3 %v1623_v53  ;;  %883 = vmatmul.bf16.vlgmr.msrb.gmra.mxu0 %v2238_v35 }
 0x149   :  { %896 = vmatmul.bf16.vlgmr.msra.gmra.mxu1 %v2246_v40 }
 0x14a   :  { %909 = vmatmul.bf16.vlgmr.msra.gmra.mxu2 %v2234_v30 }
 0x14b   :  { %922 = vmatmul.bf16.vlgmr.msrb.gmra.mxu3 %v2242_v36 }
 0x1a5   :  { %v832_v57 = vpop.f32.mrf.mxu0 }
 0x1a6   :  { %v833_v58 = vadd.f32 %v832_v57, %v499_v56  ;;  %v845_v59 = vpop.f32.mrf.mxu1 }
 0x1a8   :  { %v846_v60 = vadd.f32 %v845_v59, %v833_v58 }
 0x1ad   :  { %v858_v61 = vpop.f32.mrf.mxu2  ;;  %v834_v35 = vpop.f32.mrf.mxu0 }
 0x1ae   :  { %v859_v62 = vadd.f32 %v858_v61, %v846_v60  ;;  %v871_v63 = vpop.f32.mrf.mxu3  ;;  %v847_v2 = vpop.f32.mrf.mxu1 }
 0x1b0   :  { %v872_v1 = vadd.f32 %v871_v63, %v859_v62 }
 0x1b2   :  { %v929_v40 = vmul.f32 1.442695, %v872_v1  ;;  %vm927_vm5 = vcmp.gt.f32.partialorder %v872_v1, 0.0 }
 0x1b4   :  { %1908 = vpow2.f32 %v929_v40 }
 0x1b5   :  { %v860_v30 = vpop.f32.mrf.mxu2 }
 0x1b6   :  { %v873_v3 = vpop.f32.mrf.mxu3 }
 0x1ba   :  { %v1909_v36 = vpop.eup %1908 }
 0x1bb   :  { %v1680_v4 = vadd.f32 -1.0, %v1909_v36 }
 0x1bd   :  { %v935_v6 = vsel %vm927_vm5, %v872_v1, %v1680_v4 }
 0x1be   :  { %v939_v7 = vrot.slane %v935_v6, 4 }
 0x1c0   :  { %v940_v8 = vadd.f32 %v939_v7, %v935_v6 }
 0x1c2   :  { %v941_v10 = vrot.slane %v940_v8, 2 }
 0x1c4   :  { %v942_v11 = vadd.f32 %v941_v10, %v940_v8  ;;  %v937_v8 = vld [vmem:[%s2321_s5 + $0xe] sm:$0x3] }
 0x1c5   :  { %v884_v12 = vpop.f32.mrf.mxu0 }
 0x1c6   :  { %v885_v13 = vadd.f32 %v884_v12, %v500_v9  ;;  %v897_v14 = vpop.f32.mrf.mxu1  ;;  %v943_v15 = vrot.slane %v942_v11, 1 }
 0x1c8   :  { %v944_v16 = vadd.f32 %v943_v15, %v942_v11  ;;  %v898_v17 = vadd.f32 %v897_v14, %v885_v13  ;;  %v938_v11 = vld [vmem:[%s2321_s5 + $0x10] sm:$0x3] }
 0x1ca   :  { %v951_v18 = vmul.f32 %v944_v16, %v2175_v44  ;;  %v1007_v16 = vperm.slane %v938_v11, 0 }
 0x1cc   :  { %v2260_v20 = vsub.f32 %v935_v6, %v951_v18 }
 0x1cd   :  { %v910_v19 = vpop.f32.mrf.mxu2  ;;  %v886_v23 = vpop.f32.mrf.mxu0 }
 0x1ce   :  { %v911_v21 = vadd.f32 %v910_v19, %v898_v17  ;;  %v923_v22 = vpop.f32.mrf.mxu3  ;;  %v899_v24 = vpop.f32.mrf.mxu1  ;;  %v955_v26 = vmul.f32 %v2260_v20, %v2260_v20  ;;  %v1008_v17 = vperm.slane %v938_v11, 1 }
 0x1d0   :  { %v924_v25 = vadd.f32 %v923_v22, %v911_v21  ;;  %v957_v29 = vrot.slane %v955_v26, 4 }
 0x1d2   :  { %v931_v27 = vmul.f32 1.442695, %v924_v25  ;;  %v958_v34 = vadd.f32 %v957_v29, %v955_v26  ;;  %vm928_vm6 = vcmp.gt.f32.partialorder %v924_v25, 0.0 }
 0x1d4   :  { %1910 = vpow2.f32 %v931_v27  ;;  %v959_v43 = vrot.slane %v958_v34, 2 }
 0x1d5   :  { %v912_v28 = vpop.f32.mrf.mxu2 }
 0x1d6   :  { %v925_v32 = vpop.f32.mrf.mxu3  ;;  %v960_v46 = vadd.f32 %v959_v43, %v958_v34 }
 0x1d8   :  { %v961_v41 = vrot.slane %v960_v46, 1 }
 0x1da   :  { %v1911_v33 = vpop.eup %1910  ;;  %v962_v48 = vadd.f32 %v961_v41, %v960_v46 }
 0x1db   :  { %v1681_v37 = vadd.f32 -1.0, %v1911_v33 }
 0x1dc   :  { %v969_v49 = vmul.f32 %v962_v48, %v2175_v44 }
 0x1dd   :  { %v936_v42 = vsel %vm928_vm6, %v924_v25, %v1681_v37 }
 0x1de   :  { %v945_v45 = vrot.slane %v936_v42, 4  ;;  %v971_v52 = vadd.f32 1e-05, %v969_v49 }
 0x1e0   :  { %v946_v0 = vadd.f32 %v945_v45, %v936_v42  ;;  %1912 = vrsqrt.f32 %v971_v52  ;;  %vm979_vm11 = vweird.f32 %v971_v52 }
 0x1e2   :  { %v947_v38 = vrot.slane %v946_v0, 2 }
 0x1e4   :  { %v948_v54 = vadd.f32 %v947_v38, %v946_v0 }
 0x1e6   :  { %v949_v47 = vrot.slane %v948_v54, 1  ;;  %v1913_v59 = vpop.eup %1912 }
 0x1e7   :  { %v974_v62 = vmul.f32 %v1913_v59, %v971_v52  ;;  %vm980_vm8 = vweird.f32 %v1913_v59 }
 0x1e8   :  { %v950_v5 = vadd.f32 %v949_v47, %v948_v54  ;;  %vm981_vm12 = vmor %vm979_vm11, %vm980_vm8 }
 0x1e9   :  { %v975_v63 = vmul.f32 %v1913_v59, %v974_v62 }
 0x1ea   :  { %v952_v39 = vmul.f32 %v950_v5, %v2175_v44 }
 0x1eb   :  { %v976_v35 = vmul.f32 0.5, %v975_v63 }
 0x1ec   :  { %v954_v31 = vsub.f32 %v936_v42, %v952_v39 }
 0x1ed   :  { %v977_v30 = vsub.f32 1.5, %v976_v35 }
 0x1ee   :  { %v956_v50 = vmul.f32 %v954_v31, %v954_v31 }
 0x1ef   :  { %v978_v4 = vmul.f32 %v1913_v59, %v977_v30 }
 0x1f0   :  { %v963_v51 = vrot.slane %v956_v50, 4 }
 0x1f1   :  { %v982_v10 = vsel %vm981_vm12, %v1913_v59, %v978_v4 }
 0x1f2   :  { %v964_v53 = vadd.f32 %v963_v51, %v956_v50 }
 0x1f4   :  { %v965_v55 = vrot.slane %v964_v53, 2 }
 0x1f6   :  { %v966_v56 = vadd.f32 %v965_v55, %v964_v53 }
 0x1f8   :  { %v967_v57 = vrot.slane %v966_v56, 1 }
 0x1fa   :  { %v968_v58 = vadd.f32 %v967_v57, %v966_v56 }
 0x1fc   :  { %v970_v60 = vmul.f32 %v968_v58, %v2175_v44 }
 0x1fe   :  { %v972_v61 = vadd.f32 1e-05, %v970_v60 }
 0x200   :  { %1914 = vrsqrt.f32 %v972_v61  ;;  %vm989_vm9 = vweird.f32 %v972_v61 }
 0x206   :  { %v1915_v1 = vpop.eup %1914 }
 0x207   :  { %v984_v2 = vmul.f32 %v1915_v1, %v972_v61  ;;  %vm990_vm7 = vweird.f32 %v1915_v1 }
 0x208   :  { %vm991_vm10 = vmor %vm989_vm9, %vm990_vm7 }
 0x209   :  { %v985_v40 = vmul.f32 %v1915_v1, %v984_v2 }
 0x20b   :  { %v986_v3 = vmul.f32 0.5, %v985_v40 }
 0x20d   :  { %v987_v36 = vsub.f32 1.5, %v986_v3 }
 0x20f   :  { %v988_v6 = vmul.f32 %v1915_v1, %v987_v36 }
 0x211   :  { %v992_v7 = vsel %vm991_vm10, %v1915_v1, %v988_v6 }
 0x212   :  { %v995_v9 = vrot.slane %v992_v7, 7 }
 0x214   :  { %v996_v12 = vsel %vm391_vm2, %v982_v10, %v995_v9 }
 0x215   :  { %v998_v13 = vmul.f32 %v996_v12, %v937_v8 }
 0x217   :  { %v1000_v14 = vperm.slane %v998_v13, 0  ;;  %v1001_v15 = vperm.slane %v998_v13, 1 }
 0x219   :  { %v1004_v18 = vmul.f32 %v1000_v14, %v2260_v20  ;;  %v1005_v19 = vmul.f32 %v1001_v15, %v954_v31 }
 0x21b   :  { %v1011_v21 = vadd.f32 %v1007_v16, %v1004_v18  ;;  %v1012_v22 = vadd.f32 %v1008_v17, %v1005_v19 }
 0x21c   :  { %1974 = dma.done.wait [#allocation4 + $0x1], 2048 }
 0x21d   :  { %1975 = vsyncadd [#allocation4 + $0x1], 4294965248  ;;  %v1868_v23 = vld [vmem:[#allocation3 + $0x48] sm:$0xff]  ;;  %v1875_v26 = vld [vmem:[#allocation3 + $0x78] sm:$0xff]  ;;  %v1017_v46 = vpack.c.bf16 %v1011_v21, %v1011_v21  ;;  %v1018_v38 = vpack.c.bf16 %v1012_v22, %v1012_v22  ;;  %vm1302_vm1 = vcmask 56328   ;;  %s1981_s26 = smov 127  }
 0x21e   :  { %v1876_v24 = vld [vmem:[#allocation3 + $0x28] sm:$0xff]  ;;  %1151 = vmatpush.bf16.msra.mxu0 %v1868_v23  ;;  %v1874_v28 = vld [vmem:[#allocation3 + $0x70] sm:$0xff]  ;;  %v1873_v32 = vld [vmem:[#allocation3 + $0x60] sm:$0xff]  ;;  %s1982_s27 = smov [#allocation5]   ;;  %s1326_s7 = sshll.u32 %s2322_s6, 4  ;;  %vm1317_vm2 = vcmask 48128   ;;  %s1327_s7 = int_to_ptr.hbm [resolvable:$true] %s1326_s7 }
 0x21f   :  { %1164 = vmatpush.bf16.msrb.mxu1 %v1876_v24  ;;  %v1867_v25 = vld [vmem:[#allocation3 + $0x8] sm:$0xff]  ;;  %v1865_v29 = vld [vmem:[#allocation3 + $0x50] sm:$0xff]  ;;  %v1864_v20 = vld [vmem:[#allocation3 + $0x18] sm:$0xff]  ;;  %s1324_s28 = sshll.u32 %s1982_s27, 4  ;;  %s1325_s28 = int_to_ptr.vmem [resolvable:$true] %s1324_s28 }
 0x220   :  { %v1866_v27 = vld [vmem:[#allocation3 + $0x68] sm:$0xff]  ;;  %v1872_v33 = vld [vmem:[#allocation3 + $0x38] sm:$0xff]  ;;  %v1871_v37 = vld [vmem:[#allocation3 + $0x10] sm:$0xff] }
 0x221   :  { %v1863_v34 = vld [vmem:[#allocation3 + $0x58] sm:$0xff]  ;;  %v1862_v42 = vld [vmem:[#allocation3] sm:$0xff]  ;;  %v1861_v45 = vld [vmem:[#allocation3 + $0x30] sm:$0xff] }
 0x222   :  { %1152 = vmatpush.bf16.msra.mxu0 %v1867_v25  ;;  %v1870_v43 = vld [vmem:[#allocation3 + $0x20] sm:$0xff]  ;;  %v1884_v54 = vld [vmem:[%s2320_s4 + $0x38] sm:$0xff]  ;;  %v1883_v41 = vld [vmem:[%s2320_s4 + $0x30] sm:$0xff] }
 0x223   :  { %1165 = vmatpush.bf16.msrb.mxu1 %v1875_v26  ;;  %v1869_v0 = vld [vmem:[#allocation3 + $0x40] sm:$0xff]  ;;  %1289 = vmatpush.bf16.msrb.mxu2 %v1884_v54  ;;  %v1917_v47 = vld [vmem:[%s2321_s5 + $0x12] ss:$0 sm:$0xff]  ;;  %v1882_v5 = vld [vmem:[%s2320_s4 + $0x28] sm:$0xff] }
 0x224   :  { %v1881_v49 = vld [vmem:[%s2320_s4 + $0x20] sm:$0xff]  ;;  %v1880_v52 = vld [vmem:[%s2320_s4 + $0x18] sm:$0xff]  ;;  %v1879_v56 = vld [vmem:[%s2320_s4 + $0x10] sm:$0xff] }
 0x225   :  { %v1878_v58 = vld [vmem:[%s2320_s4 + $0x8] sm:$0xff]  ;;  %v1877_v62 = vld [vmem:[%s2320_s4] sm:$0xff]  ;;  %v1182_v18 = vld [vmem:[%s2321_s5 + $0x13] sm:$0x1] }
 0x226   :  { %1153 = vmatpush.bf16.msra.mxu0 %v1866_v27  ;;  %v1980_v27 = vmov 0  }
 0x227   :  { %1166 = vmatpush.bf16.msrb.mxu1 %v1874_v28  ;;  %1290 = vmatpush.bf16.msrb.mxu2 %v1883_v41  ;;  %v1919_v28 = vld [vmem:[%s2321_s5 + $0x15] ss:$0 sm:$0xff] }
 0x228   :  { %1916 = vset.pattern.permute.xlu0 %v1980_v27 }
 0x22a   :  { %1154 = vmatpush.bf16.msra.mxu0 %v1865_v29 }
 0x22b   :  { %1167 = vmatpush.bf16.msrb.mxu1 %v1873_v32  ;;  %1291 = vmatpush.bf16.msrb.mxu2 %v1882_v5 }
 0x22e   :  { %1155 = vmatpush.bf16.msra.mxu0 %v1864_v20 }
 0x22f   :  { %1168 = vmatpush.bf16.msrb.mxu1 %v1872_v33  ;;  %1292 = vmatpush.bf16.msrb.mxu2 %v1881_v49 }
 0x232   :  { %1156 = vmatpush.bf16.msra.mxu0 %v1863_v34 }
 0x233   :  { %1169 = vmatpush.bf16.msrb.mxu1 %v1871_v37  ;;  %1293 = vmatpush.bf16.msrb.mxu2 %v1880_v52 }
 0x236   :  { %1157 = vmatpush.bf16.msra.mxu0 %v1862_v42 }
 0x237   :  { %1170 = vmatpush.bf16.msrb.mxu1 %v1870_v43  ;;  %1294 = vmatpush.bf16.msrb.mxu2 %v1879_v56 }
 0x23a   :  { %1158 = vmatpush.bf16.msra.mxu0 %v1861_v45 }
 0x23b   :  { %1171 = vmatpush.bf16.msrb.mxu1 %v1869_v0  ;;  %1295 = vmatpush.bf16.msrb.mxu2 %v1878_v58 }
 0x23d   :  { %1159 = vmatmul.bf16.vlgmr.msra.gmra.mxu0 %v1017_v46 }
 0x23e   :  { %1172 = vmatmul.bf16.vlgmr.msrb.gmra.mxu1 %v1018_v38 }
 0x23f   :  { %1296 = vmatpush.bf16.msrb.mxu2 %v1877_v62 }
 0x2ba   :  { %v1160_v48 = vpop.f32.mrf.mxu0 }
 0x2bb   :  { %v1173_v39 = vpop.f32.mrf.mxu1  ;;  %v1161_v31 = vadd.f32 %v1917_v47, %v1160_v48 }
 0x2bd   :  { %v1174_v50 = vadd.f32 %v1173_v39, %v1161_v31 }
 0x2bf   :  { %v1178_v51 = vmul.f32 1.442695, %v1174_v50  ;;  %vm1177_vm13 = vcmp.gt.f32.partialorder %v1174_v50, 0.0 }
 0x2c1   :  { %1920 = vpow2.f32 %v1178_v51 }
 0x2c2   :  { %v1162_v53 = vpop.f32.mrf.mxu0 }
 0x2c3   :  { %v1175_v55 = vpop.f32.mrf.mxu1 }
 0x2c7   :  { %v1921_v57 = vpop.eup %1920 }
 0x2c8   :  { %v1746_v59 = vadd.f32 -1.0, %v1921_v57 }
 0x2ca   :  { %v1181_v60 = vsel %vm1177_vm13, %v1174_v50, %v1746_v59 }
 0x2cb   :  { %v1184_v61 = vrot.slane %v1181_v60, 4 }
 0x2cd   :  { %v1185_v63 = vadd.f32 %v1184_v61, %v1181_v60 }
 0x2cf   :  { %v1186_v1 = vrot.slane %v1185_v63, 2 }
 0x2d1   :  { %v1187_v35 = vadd.f32 %v1186_v1, %v1185_v63 }
 0x2d3   :  { %v1188_v2 = vrot.slane %v1187_v35, 1 }
 0x2d5   :  { %v1189_v40 = vadd.f32 %v1188_v2, %v1187_v35 }
 0x2d7   :  { %v1190_v30 = vmul.f32 %v1189_v40, %v2175_v44 }
 0x2d9   :  { %v1191_v3 = vsub.f32 %v1181_v60, %v1190_v30 }
 0x2db   :  { %v1192_v36 = vmul.f32 %v1191_v3, %v1191_v3 }
 0x2dd   :  { %v1193_v4 = vrot.slane %v1192_v36, 4 }
 0x2df   :  { %v1194_v6 = vadd.f32 %v1193_v4, %v1192_v36 }
 0x2e1   :  { %v1195_v7 = vrot.slane %v1194_v6, 2 }
 0x2e3   :  { %v1196_v8 = vadd.f32 %v1195_v7, %v1194_v6 }
 0x2e5   :  { %v1197_v9 = vrot.slane %v1196_v8, 1 }
 0x2e7   :  { %v1198_v10 = vadd.f32 %v1197_v9, %v1196_v8 }
 0x2e9   :  { %v1199_v11 = vmul.f32 %v1198_v10, %v2175_v44  ;;  %v1918_v44 = vld [vmem:[%s2321_s5 + $0x14] ss:$0 sm:$0xff] }
 0x2eb   :  { %v1200_v12 = vadd.f32 1e-05, %v1199_v11 }
 0x2ed   :  { %1922 = vrsqrt.f32 %v1200_v12  ;;  %vm1207_vm15 = vweird.f32 %v1200_v12 }
 0x2f3   :  { %v1923_v13 = vpop.eup %1922 }
 0x2f4   :  { %v1202_v14 = vmul.f32 %v1923_v13, %v1200_v12  ;;  %vm1208_vm14 = vweird.f32 %v1923_v13 }
 0x2f5   :  { %vm1209_vm0 = vmor %vm1207_vm15, %vm1208_vm14 }
 0x2f6   :  { %v1203_v15 = vmul.f32 %v1923_v13, %v1202_v14 }
 0x2f8   :  { %v1204_v16 = vmul.f32 0.5, %v1203_v15 }
 0x2fa   :  { %v1205_v17 = vsub.f32 1.5, %v1204_v16 }
 0x2fc   :  { %v1206_v19 = vmul.f32 %v1923_v13, %v1205_v17 }
 0x2fe   :  { %v1210_v21 = vsel %vm1209_vm0, %v1923_v13, %v1206_v19 }
 0x2ff   :  { %v1211_v22 = vmul.f32 %v1210_v21, %v1182_v18 }
 0x301   :  { %v1213_v23 = vperm.slane %v1211_v22, 0 }
 0x303   :  { %v1215_v24 = vmul.f32 %v1213_v23, %v1191_v3 }
 0x305   :  { %v1219_v25 = vadd.f32 %v1918_v44, %v1215_v24 }
 0x307   :  { %v1220_v26 = vpack.c.bf16 %v1219_v25, %v1219_v25 }
 0x309   :  { %1297 = vmatmul.bf16.vlgmr.msrb.gmra.mxu2 %v1220_v26 }
 0x38c   :  { %v1298_v29 = vpop.f32.mrf.mxu2 }
 0x38d   :  { %v1299_v32 = vadd.f32 %v1919_v28, %v1298_v29 }
 0x38f   :  { %v1303_v20 = vsel %vm1302_vm1, %v1299_v32, -inf }
 0x390   :  { %1304 = vmax.xlane.f32.xlu0 %v1303_v20 }
 0x394   :  { %v1300_v33 = vpop.f32.mrf.mxu2 }
 0x3a4   :  { %1309 = vperm.xlu0 %1916, %v1299_v32  }
 0x403   :  { %v1305_v34 = vpop.xlane.xlu0 %1304 }
 0x404   :  { %v1306_v37 = vsub.f32 %v1299_v32, %v1305_v34 }
 0x416   :  { %v1310_v42 = vpop.permute.xlu0 %1309 }
 0x417   :  { %v1312_v43 = vadd.f32 %v1310_v42, %v1306_v37 }
 0x419   :  { %1314 = vrot.lane.b32.xlu1 %v1312_v43, %s1981_s26 }
 0x48b   :  { %v1315_v45 = vpop.permute.xlu1 %1314 }
 0x48c   :  { %1318 = vst.msk [vmem:[#allocation5] sm:$0xff] %vm1317_vm2, %v1315_v45 }
 0x48d   :  { %1329 = dma.vmem_to_hbm [thread:$0]  %s1325_s28, 128, %s1327_s7, [#allocation6]  }
 0x48e   :  { %1976 = dma.done.wait [#allocation6], 128  }
 0x48f   :  { %1977 = vsyncadd [#allocation6], 4294967168 }
 0x490   :  { %1334 = vsyncpa [#allocation6], 1 }
 0x491   :  { %1335 = vsyncmov [#allocation4] }
 0x494   :  { %s1336_s5 = vpop.sfrf %1335 }
 0x495   :  { %p1779_p0 = scmp.ne.s32.totalorder %s1336_s5, 0 }
 0x497   :  { %1340 = shalt.err (%p1779_p0)  }
 0x498   :  { %1342 = vsyncmov [#allocation4 + $0x1] }
 0x49b   :  { %s1343_s8 = vpop.sfrf %1342 }
 0x49c   :  { %p1780_p1 = scmp.ne.s32.totalorder %s1343_s8, 0 }
 0x49e   :  { %1347 = shalt.err (%p1780_p1)  }

</bundles_post_ra>
